<compile_context>
chip_gen: v7x
topology: tpu7x:2x2x1
jax: 0.10.0
libtpu: 0.0.40
codegen_flags: <defaults>
</compile_context>

<pallas_src>
import functools

import jax
import jax.numpy as jnp
from jax.experimental import pallas as pl
from jax.experimental.pallas import tpu as pltpu


# ---------------------------------------------------------------------------
# Fused per-layer Pallas kernel
# ---------------------------------------------------------------------------
def _convlstm_layer_kernel(x_ref, l_ref, w_ref, b_ref,
                           hseq_ref, clast_ref,
                           xk_st, cc_st, c_st, *, K, Cin, H):
    """One ConvLSTMCell step at grid point (batch n, time t).

    x_ref    : (M, Cin)      input signal for (n, t), vertices x features
    l_ref    : (M, M)        rescaled Laplacian (L - I for lmax=2)
    w_ref    : (K*Fin, 4H)   GCLayer weight, contraction rows ordered (k, f)
    b_ref    : (4H, 1)       GCLayer bias
    hseq_ref : (H, M)        hidden output block for (n, t)
    clast_ref: (H, M)        cell-state output block (revisited over t)
    xk_st    : (M, K*Fin)    VMEM: stacked Chebyshev basis of [x_t | h_{t-1}];
                             lanes [Cin:Fin) persistently hold h_{t-1}^T
    cc_st    : (4H, M)       VMEM: torch raw-view relayout scratch
    c_st     : (H, M)        VMEM: carried cell state c_{t-1}
    """
    t = pl.program_id(1)
    M = x_ref.shape[0]
    Fin = Cin + H
    Fout = 4 * H

    # --- recurrent state init (state stays resident in VMEM across time) ---
    @pl.when(t == 0)
    def _():
        xk_st[:, Cin:Fin] = jnp.zeros((M, H), jnp.float32)   # h_{-1} = 0
        c_st[...] = jnp.zeros((H, M), jnp.float32)           # c_{-1} = 0

    # current input signal (vertices x features); h_{t-1}^T already resident.
    xk_st[:, 0:Cin] = x_ref[...].astype(jnp.float32)

    # --- Chebyshev basis  T_k(L) @ [x_t^T | h_{t-1}^T], stacked along lanes ---
    x0 = xk_st[:, 0:Fin]                                     # (M, Fin)
    if K > 1:
        lm = l_ref[...]
        x1 = jnp.dot(lm, x0, preferred_element_type=jnp.float32)
        xk_st[:, Fin:2 * Fin] = x1
        xp, xc = x0, x1
        for k in range(2, K):
            xn = 2.0 * jnp.dot(lm, xc, preferred_element_type=jnp.float32) - xp
            xk_st[:, k * Fin:(k + 1) * Fin] = xn
            xp, xc = xc, xn

    # --- single MXU matmul over the whole K*Fin contraction ---
    gc = jnp.dot(xk_st[...], w_ref[...],
                 preferred_element_type=jnp.float32)         # (M, 4H)

    # --- torch raw view: row-major (M, 4H) block reinterpreted as (4H, M).
    # Done with static sub-row copies through a VMEM scratch (no reshape).
    for a in range(Fout):
        written = 0
        while written < M:
            p = a * M + written
            r, c = p // Fout, p % Fout
            take = min(M - written, Fout - c)
            cc_st[a:a + 1, written:written + take] = gc[r:r + 1, c:c + take]
            written += take

    # --- fused LSTM gate epilogue ---
    cc = cc_st[...] + b_ref[...]                             # (4H, M) + (4H, 1)
    gi = jax.nn.sigmoid(cc[0 * H:1 * H, :])
    gf = jax.nn.sigmoid(cc[1 * H:2 * H, :])
    go = jax.nn.sigmoid(cc[2 * H:3 * H, :])
    gg = jnp.tanh(cc[3 * H:4 * H, :])
    c_next = gf * c_st[...] + gi * gg                        # (H, M)
    h_next = go * jnp.tanh(c_next)                           # (H, M)

    # --- outputs + carried state for step t+1 ---
    hseq_ref[...] = h_next
    clast_ref[...] = c_next
    c_st[...] = c_next
    # h_t^T back into the T_0 slot of xk_st.  Transpose done as a tiny MXU
    # matmul against the identity (trans_b dot_general) to avoid relying on a
    # general vector-transpose lowering for odd (H, M) shapes.
    eye_m = (jax.lax.broadcasted_iota(jnp.int32, (M, M), 0) ==
             jax.lax.broadcasted_iota(jnp.int32, (M, M), 1)).astype(jnp.float32)
    h_t = jax.lax.dot_general(eye_m, h_next, (((1,), (1,)), ((), ())),
                              preferred_element_type=jnp.float32)  # (M, H)
    xk_st[:, Cin:Fin] = h_t


# ---------------------------------------------------------------------------
# Wrappers (glue)
# ---------------------------------------------------------------------------
def convlstm_layer(x_ntmc, l_scaled, w_stacked, bias_2d, *, K, H):
    """Run a whole ConvLSTM layer (all timesteps, all batches) in one pallas_call.

    x_ntmc: (N, T, M, Cin)  ->  (h_seq (N, T, H, M), c_last (N, H, M))
    """
    N, T, M, Cin = x_ntmc.shape
    Fin = Cin + H
    Fout = 4 * H
    kern = functools.partial(_convlstm_layer_kernel, K=K, Cin=Cin, H=H)
    h_seq, c_last = pl.pallas_call(
        kern,
        grid=(N, T),
        in_specs=[
            pl.BlockSpec((None, None, M, Cin), lambda n, t: (n, t, 0, 0)),
            # L kept fully resident in VMEM; fine for small graphs.
            # TODO(synk): tile the L @ x contraction over vertex blocks (and set
            # vmem_limit_bytes) if M grows large enough that (M, M) f32 no
            # longer fits v7x's 64 MiB VMEM.
            pl.BlockSpec((M, M), lambda n, t: (0, 0)),
            pl.BlockSpec((K * Fin, Fout), lambda n, t: (0, 0)),
            pl.BlockSpec((Fout, 1), lambda n, t: (0, 0)),
        ],
        out_specs=[
            pl.BlockSpec((None, None, H, M), lambda n, t: (n, t, 0, 0)),
            pl.BlockSpec((None, H, M), lambda n, t: (n, 0, 0)),
        ],
        out_shape=(
            jax.ShapeDtypeStruct((N, T, H, M), jnp.float32),
            jax.ShapeDtypeStruct((N, H, M), jnp.float32),
        ),
        scratch_shapes=[
            pltpu.VMEM((M, K * Fin), jnp.float32),   # stacked Chebyshev basis / h state
            pltpu.VMEM((Fout, M), jnp.float32),      # raw-view relayout scratch
            pltpu.VMEM((H, M), jnp.float32),         # carried cell state
        ],
        compiler_params=pltpu.CompilerParams(
            dimension_semantics=("parallel", "arbitrary")),
    )(x_ntmc.astype(jnp.float32), l_scaled, w_stacked, bias_2d)
    return h_seq, c_last


def init_convlstm_params(key, input_dim, hidden_dim, k, num_layers):
    """Deterministic parameter init, mirroring the torch module's __init__."""
    hidden_dims = hidden_dim if isinstance(hidden_dim, list) else [hidden_dim] * num_layers
    ks = k if isinstance(k, list) else [k] * num_layers
    params = []
    for i in range(num_layers):
        cur_in = input_dim if i == 0 else hidden_dims[i - 1]
        Fin = cur_in + hidden_dims[i]
        Fout = 4 * hidden_dims[i]
        K = ks[i]
        w = jnp.ones((Fin * K, Fout), jnp.float32) / float(Fin * K * Fout)
        key, sub = jax.random.split(key)
        b = jax.random.uniform(sub, (1, Fout, 1), jnp.float32)          # torch.rand
        # torch stores the contraction as (f, k): w[f*K + k, fo].  The kernel
        # stacks the basis as [T_0 | ... | T_{K-1}] along features, so reorder
        # rows to (k, f):  w_stacked[k*Fin + f, fo] = w[f*K + k, fo].
        w_stacked = jnp.transpose(w.reshape(Fin, K, Fout), (1, 0, 2)).reshape(K * Fin, Fout)
        params.append(dict(w=w, w_stacked=w_stacked, b=b, K=K, H=hidden_dims[i]))
    # TODO(synk): `conv0` GCLayer exists in the torch module but is never used
    # in forward(), so it is intentionally not instantiated here.
    return params


def convlstm_forward(x_btcm, l_scaled, params):
    """ConvLSTM.forward (batch_first=True, return_all_layers=True).

    x_btcm: (B, T, C, M).  Returns (layer_output_list, last_state_list).
    """
    layer_output_list, last_state_list = [], []
    cur = x_btcm.astype(jnp.float32)                                    # (B, T, F, M)
    for layer in params:
        # one relayout per layer (NOT per timestep): (B, T, F, M) -> (B, T, M, F)
        x_ntmc = jnp.transpose(cur, (0, 1, 3, 2))
        h_seq, c_last = convlstm_layer(x_ntmc, l_scaled, layer["w_stacked"],
                                       layer["b"][0], K=layer["K"], H=layer["H"])
        layer_output_list.append(h_seq)                                 # (B, T, H, M)
        last_state_list.append((h_seq[:, -1], c_last))
        cur = h_seq
    return layer_output_list, last_state_list


# ---------------------------------------------------------------------------
# Pure-jnp reference (mirrors the torch code op-for-op) for a sanity check
# ---------------------------------------------------------------------------
def _gclayer_ref(x, l_scaled, w, b, K):
    N, Fin, M = x.shape
    Fout = w.shape[1]
    x0 = jnp.transpose(x, (2, 1, 0)).reshape(M, Fin * N)
    xs = [x0]
    if K > 1:
        x1 = l_scaled @ x0
        xs.append(x1)
        for _k in range(2, K):
            x2 = 2.0 * (l_scaled @ x1) - x0
            xs.append(x2)
            x0, x1 = x1, x2
    xk = jnp.stack(xs, 0).reshape(K, M, Fin, N)
    xk = jnp.transpose(xk, (3, 1, 2, 0)).reshape(N * M, Fin * K)
    y = (xk @ w).reshape(N, Fout, M)                                    # raw view
    return y + b


def convlstm_forward_ref(x_btcm, l_scaled, params):
    B, T, _, M = x_btcm.shape
    layer_output_list, last_state_list = [], []
    cur = x_btcm
    for layer in params:
        H, K = layer["H"], layer["K"]
        h = jnp.zeros((B, H, M), jnp.float32)
        c = jnp.zeros((B, H, M), jnp.float32)
        outs = []
        for t in range(T):
            combined = jnp.concatenate([cur[:, t], h], axis=1)
            cc = _gclayer_ref(combined, l_scaled, layer["w"], layer["b"], K)
            i = jax.nn.sigmoid(cc[:, 0 * H:1 * H])
            f = jax.nn.sigmoid(cc[:, 1 * H:2 * H])
            o = jax.nn.sigmoid(cc[:, 2 * H:3 * H])
            g = jnp.tanh(cc[:, 3 * H:4 * H])
            c = f * c + i * g
            h = o * jnp.tanh(c)
            outs.append(h)
        cur = jnp.stack(outs, axis=1)
        layer_output_list.append(cur)
        last_state_list.append((h, c))
    return layer_output_list, last_state_list


# ---------------------------------------------------------------------------
if __name__ == "__main__":
    key = jax.random.PRNGKey(0)
    B, T, C, M = 2, 4, 4, 16          # batch, seq, input_dim, num vertices
    HIDDEN, K, NUM_LAYERS = 8, 3, 2

    # Deterministic ring-graph normalized Laplacian (eigenvalues in [0, 2]);
    # graph.rescale_L(L, lmax=2) -> L_scaled = L - I.
    idx = jnp.arange(M)
    adj = jnp.zeros((M, M), jnp.float32)
    adj = adj.at[idx, (idx + 1) % M].set(1.0)
    adj = adj.at[(idx + 1) % M, idx].set(1.0)
    d_inv_sqrt = 1.0 / jnp.sqrt(adj.sum(axis=1))
    lap = jnp.eye(M, dtype=jnp.float32) - d_inv_sqrt[:, None] * adj * d_inv_sqrt[None, :]
    l_scaled = lap - jnp.eye(M, dtype=jnp.float32)

    key, kp, kx = jax.random.split(key, 3)
    params = init_convlstm_params(kp, C, HIDDEN, K, NUM_LAYERS)
    x = jax.random.normal(kx, (B, T, C, M), jnp.float32)

    fwd = jax.jit(lambda xx: convlstm_forward(xx, l_scaled, params))
    layer_outputs, last_states = fwd(x)
    jax.block_until_ready(layer_outputs)
    jax.block_until_ready(last_states)

    # sanity check against the pure-jnp reference (torch op-for-op mirror)
    ref_outputs, ref_states = convlstm_forward_ref(x, l_scaled, params)
    for a, r in zip(layer_outputs, ref_outputs):
        assert jnp.allclose(a, r, atol=1e-4, rtol=1e-4)
    for (h, c), (hr, cr) in zip(last_states, ref_states):
        assert jnp.allclose(h, hr, atol=1e-4, rtol=1e-4)
        assert jnp.allclose(c, cr, atol=1e-4, rtol=1e-4)

    print("KERNEL_OK")
</pallas_src>

<mosaic_0001>
module attributes {stable_mosaic.version = 11 : i64} {
  func.func @_convlstm_layer_kernel(%arg0: i32, %arg1: i32, %arg2: memref<1x1x16x4xf32, #tpu.memory_space<vmem>>, %arg3: memref<16x16xf32, #tpu.memory_space<vmem>>, %arg4: memref<36x32xf32, #tpu.memory_space<vmem>>, %arg5: memref<32x1xf32, #tpu.memory_space<vmem>>, %arg6: memref<1x1x8x16xf32, #tpu.memory_space<vmem>>, %arg7: memref<1x8x16xf32, #tpu.memory_space<vmem>>, %arg8: memref<16x36xf32, #tpu.memory_space<vmem>>, %arg9: memref<32x16xf32, #tpu.memory_space<vmem>>, %arg10: memref<8x16xf32, #tpu.memory_space<vmem>>) attributes {dimension_semantics = [#tpu.dimension_semantics<parallel>, #tpu.dimension_semantics<arbitrary>], iteration_bounds = array<i64: 2, 4>, scalar_prefetch = 0 : i64, scratch_operands = 3 : i64, tpu.core_type = #tpu.core_type<tc>, window_params = [{transform_indices = @transform_0, window_bounds = array<i64: 1, 1, 16, 4>}, {pipeline_mode = #tpu.pipeline_mode<synchronous>, transform_indices = @transform_1, window_bounds = array<i64: 16, 16>}, {pipeline_mode = #tpu.pipeline_mode<synchronous>, transform_indices = @transform_2, window_bounds = array<i64: 36, 32>}, {pipeline_mode = #tpu.pipeline_mode<synchronous>, transform_indices = @transform_3, window_bounds = array<i64: 32, 1>}, {transform_indices = @transform_4, window_bounds = array<i64: 1, 1, 8, 16>}, {transform_indices = @transform_5, window_bounds = array<i64: 1, 8, 16>}]} {
    %c0_i32 = arith.constant 0 : i32
    %0 = arith.cmpi eq, %arg1, %c0_i32 : i32
    %1 = arith.extui %0 : i1 to i32
    %c0_i32_0 = arith.constant 0 : i32
    %2 = arith.cmpi ne, %1, %c0_i32_0 : i32
    scf.if %2 {
      %cst_75 = arith.constant 0.000000e+00 : f32
      %126 = vector.broadcast %cst_75 : f32 to vector<16x8xf32>
      %c0_76 = arith.constant 0 : index
      %c4_77 = arith.constant 4 : index
      %127 = vector.load %arg8[%c0_76, %c4_77] : memref<16x36xf32, #tpu.memory_space<vmem>>, vector<16x8xf32>
      tpu.vector_store %arg8[%c0_76, %c4_77], %126 {strides = array<i32>} : memref<16x36xf32, #tpu.memory_space<vmem>>, vector<16x8xf32>,
      %cst_78 = arith.constant 0.000000e+00 : f32
      %128 = vector.broadcast %cst_78 : f32 to vector<8x16xf32>
      %c0_79 = arith.constant 0 : index
      %c0_80 = arith.constant 0 : index
      %129 = vector.load %arg10[%c0_79, %c0_80] : memref<8x16xf32, #tpu.memory_space<vmem>>, vector<8x16xf32>
      tpu.vector_store %arg10[%c0_79, %c0_80], %128 {strides = array<i32>} : memref<8x16xf32, #tpu.memory_space<vmem>>, vector<8x16xf32>,
    } else {
    }
    %c0 = arith.constant 0 : index
    %c0_1 = arith.constant 0 : index
    %c0_2 = arith.constant 0 : index
    %c0_3 = arith.constant 0 : index
    %3 = vector.load %arg2[%c0, %c0_1, %c0_2, %c0_3] : memref<1x1x16x4xf32, #tpu.memory_space<vmem>>, vector<1x1x16x4xf32>
    %4 = vector.shape_cast %3 : vector<1x1x16x4xf32> to vector<16x4xf32>
    %c0_4 = arith.constant 0 : index
    %c0_5 = arith.constant 0 : index
    %5 = vector.load %arg8[%c0_4, %c0_5] : memref<16x36xf32, #tpu.memory_space<vmem>>, vector<16x4xf32>
    tpu.vector_store %arg8[%c0_4, %c0_5], %4 {strides = array<i32>} : memref<16x36xf32, #tpu.memory_space<vmem>>, vector<16x4xf32>,
    %c0_6 = arith.constant 0 : index
    %c0_7 = arith.constant 0 : index
    %6 = vector.load %arg8[%c0_6, %c0_7] : memref<16x36xf32, #tpu.memory_space<vmem>>, vector<16x12xf32>
    %c0_8 = arith.constant 0 : index
    %c0_9 = arith.constant 0 : index
    %7 = vector.load %arg3[%c0_8, %c0_9] : memref<16x16xf32, #tpu.memory_space<vmem>>, vector<16x16xf32>
    %cst = arith.constant dense<0.000000e+00> : vector<16x12xf32>
    %8 = tpu.matmul %7, %6, %cst {dimension_numbers = #tpu.dot_dimension_numbers<[1], [0], [0], [1], [0, 0, 1, 1], [], []>} : vector<16x16xf32>, vector<16x12xf32>, vector<16x12xf32> -> vector<16x12xf32>
    %c0_10 = arith.constant 0 : index
    %c12 = arith.constant 12 : index
    %9 = vector.load %arg8[%c0_10, %c12] : memref<16x36xf32, #tpu.memory_space<vmem>>, vector<16x12xf32>
    tpu.vector_store %arg8[%c0_10, %c12], %8 {strides = array<i32>} : memref<16x36xf32, #tpu.memory_space<vmem>>, vector<16x12xf32>,
    %cst_11 = arith.constant dense<0.000000e+00> : vector<16x12xf32>
    %10 = tpu.matmul %7, %8, %cst_11 {dimension_numbers = #tpu.dot_dimension_numbers<[1], [0], [0], [1], [0, 0, 1, 1], [], []>} : vector<16x16xf32>, vector<16x12xf32>, vector<16x12xf32> -> vector<16x12xf32>
    %cst_12 = arith.constant 2.000000e+00 : f32
    %11 = vector.broadcast %cst_12 : f32 to vector<16x12xf32>
    %12 = arith.mulf %11, %10 : vector<16x12xf32>
    %13 = arith.subf %12, %6 : vector<16x12xf32>
    %c0_13 = arith.constant 0 : index
    %c24 = arith.constant 24 : index
    %14 = vector.load %arg8[%c0_13, %c24] : memref<16x36xf32, #tpu.memory_space<vmem>>, vector<16x12xf32>
    tpu.vector_store %arg8[%c0_13, %c24], %13 {strides = array<i32>} : memref<16x36xf32, #tpu.memory_space<vmem>>, vector<16x12xf32>,
    %c0_14 = arith.constant 0 : index
    %c0_15 = arith.constant 0 : index
    %15 = vector.load %arg8[%c0_14, %c0_15] : memref<16x36xf32, #tpu.memory_space<vmem>>, vector<16x36xf32>
    %c0_16 = arith.constant 0 : index
    %c0_17 = arith.constant 0 : index
    %16 = vector.load %arg4[%c0_16, %c0_17] : memref<36x32xf32, #tpu.memory_space<vmem>>, vector<36x32xf32>
    %cst_18 = arith.constant dense<0.000000e+00> : vector<16x32xf32>
    %17 = tpu.matmul %15, %16, %cst_18 {dimension_numbers = #tpu.dot_dimension_numbers<[1], [0], [0], [1], [0, 0, 1, 1], [], []>} : vector<16x36xf32>, vector<36x32xf32>, vector<16x32xf32> -> vector<16x32xf32>
    %18 = vector.extract_strided_slice %17 {offsets = [0, 0], sizes = [1, 16], strides = [1, 1]} : vector<16x32xf32> to vector<1x16xf32>
    %c0_19 = arith.constant 0 : index
    %c0_20 = arith.constant 0 : index
    %19 = vector.load %arg9[%c0_19, %c0_20] : memref<32x16xf32, #tpu.memory_space<vmem>>, vector<1x16xf32>
    tpu.vector_store %arg9[%c0_19, %c0_20], %18 {strides = array<i32>} : memref<32x16xf32, #tpu.memory_space<vmem>>, vector<1x16xf32>,
    %20 = vector.extract_strided_slice %17 {offsets = [0, 16], sizes = [1, 16], strides = [1, 1]} : vector<16x32xf32> to vector<1x16xf32>
    %c1 = arith.constant 1 : index
    %c0_21 = arith.constant 0 : index
    %21 = vector.load %arg9[%c1, %c0_21] : memref<32x16xf32, #tpu.memory_space<vmem>>, vector<1x16xf32>
    tpu.vector_store %arg9[%c1, %c0_21], %20 {strides = array<i32>} : memref<32x16xf32, #tpu.memory_space<vmem>>, vector<1x16xf32>,
    %22 = vector.extract_strided_slice %17 {offsets = [1, 0], sizes = [1, 16], strides = [1, 1]} : vector<16x32xf32> to vector<1x16xf32>
    %c2 = arith.constant 2 : index
    %c0_22 = arith.constant 0 : index
    %23 = vector.load %arg9[%c2, %c0_22] : memref<32x16xf32, #tpu.memory_space<vmem>>, vector<1x16xf32>
    tpu.vector_store %arg9[%c2, %c0_22], %22 {strides = array<i32>} : memref<32x16xf32, #tpu.memory_space<vmem>>, vector<1x16xf32>,
    %24 = vector.extract_strided_slice %17 {offsets = [1, 16], sizes = [1, 16], strides = [1, 1]} : vector<16x32xf32> to vector<1x16xf32>
    %c3 = arith.constant 3 : index
    %c0_23 = arith.constant 0 : index
    %25 = vector.load %arg9[%c3, %c0_23] : memref<32x16xf32, #tpu.memory_space<vmem>>, vector<1x16xf32>
    tpu.vector_store %arg9[%c3, %c0_23], %24 {strides = array<i32>} : memref<32x16xf32, #tpu.memory_space<vmem>>, vector<1x16xf32>,
    %26 = vector.extract_strided_slice %17 {offsets = [2, 0], sizes = [1, 16], strides = [1, 1]} : vector<16x32xf32> to vector<1x16xf32>
    %c4 = arith.constant 4 : index
    %c0_24 = arith.constant 0 : index
    %27 = vector.load %arg9[%c4, %c0_24] : memref<32x16xf32, #tpu.memory_space<vmem>>, vector<1x16xf32>
    tpu.vector_store %arg9[%c4, %c0_24], %26 {strides = array<i32>} : memref<32x16xf32, #tpu.memory_space<vmem>>, vector<1x16xf32>,
    %28 = vector.extract_strided_slice %17 {offsets = [2, 16], sizes = [1, 16], strides = [1, 1]} : vector<16x32xf32> to vector<1x16xf32>
    %c5 = arith.constant 5 : index
    %c0_25 = arith.constant 0 : index
    %29 = vector.load %arg9[%c5, %c0_25] : memref<32x16xf32, #tpu.memory_space<vmem>>, vector<1x16xf32>
    tpu.vector_store %arg9[%c5, %c0_25], %28 {strides = array<i32>} : memref<32x16xf32, #tpu.memory_space<vmem>>, vector<1x16xf32>,
    %30 = vector.extract_strided_slice %17 {offsets = [3, 0], sizes = [1, 16], strides = [1, 1]} : vector<16x32xf32> to vector<1x16xf32>
    %c6 = arith.constant 6 : index
    %c0_26 = arith.constant 0 : index
    %31 = vector.load %arg9[%c6, %c0_26] : memref<32x16xf32, #tpu.memory_space<vmem>>, vector<1x16xf32>
    tpu.vector_store %arg9[%c6, %c0_26], %30 {strides = array<i32>} : memref<32x16xf32, #tpu.memory_space<vmem>>, vector<1x16xf32>,
    %32 = vector.extract_strided_slice %17 {offsets = [3, 16], sizes = [1, 16], strides = [1, 1]} : vector<16x32xf32> to vector<1x16xf32>
    %c7 = arith.constant 7 : index
    %c0_27 = arith.constant 0 : index
    %33 = vector.load %arg9[%c7, %c0_27] : memref<32x16xf32, #tpu.memory_space<vmem>>, vector<1x16xf32>
    tpu.vector_store %arg9[%c7, %c0_27], %32 {strides = array<i32>} : memref<32x16xf32, #tpu.memory_space<vmem>>, vector<1x16xf32>,
    %34 = vector.extract_strided_slice %17 {offsets = [4, 0], sizes = [1, 16], strides = [1, 1]} : vector<16x32xf32> to vector<1x16xf32>
    %c8 = arith.constant 8 : index
    %c0_28 = arith.constant 0 : index
    %35 = vector.load %arg9[%c8, %c0_28] : memref<32x16xf32, #tpu.memory_space<vmem>>, vector<1x16xf32>
    tpu.vector_store %arg9[%c8, %c0_28], %34 {strides = array<i32>} : memref<32x16xf32, #tpu.memory_space<vmem>>, vector<1x16xf32>,
    %36 = vector.extract_strided_slice %17 {offsets = [4, 16], sizes = [1, 16], strides = [1, 1]} : vector<16x32xf32> to vector<1x16xf32>
    %c9 = arith.constant 9 : index
    %c0_29 = arith.constant 0 : index
    %37 = vector.load %arg9[%c9, %c0_29] : memref<32x16xf32, #tpu.memory_space<vmem>>, vector<1x16xf32>
    tpu.vector_store %arg9[%c9, %c0_29], %36 {strides = array<i32>} : memref<32x16xf32, #tpu.memory_space<vmem>>, vector<1x16xf32>,
    %38 = vector.extract_strided_slice %17 {offsets = [5, 0], sizes = [1, 16], strides = [1, 1]} : vector<16x32xf32> to vector<1x16xf32>
    %c10 = arith.constant 10 : index
    %c0_30 = arith.constant 0 : index
    %39 = vector.load %arg9[%c10, %c0_30] : memref<32x16xf32, #tpu.memory_space<vmem>>, vector<1x16xf32>
    tpu.vector_store %arg9[%c10, %c0_30], %38 {strides = array<i32>} : memref<32x16xf32, #tpu.memory_space<vmem>>, vector<1x16xf32>,
    %40 = vector.extract_strided_slice %17 {offsets = [5, 16], sizes = [1, 16], strides = [1, 1]} : vector<16x32xf32> to vector<1x16xf32>
    %c11 = arith.constant 11 : index
    %c0_31 = arith.constant 0 : index
    %41 = vector.load %arg9[%c11, %c0_31] : memref<32x16xf32, #tpu.memory_space<vmem>>, vector<1x16xf32>
    tpu.vector_store %arg9[%c11, %c0_31], %40 {strides = array<i32>} : memref<32x16xf32, #tpu.memory_space<vmem>>, vector<1x16xf32>,
    %42 = vector.extract_strided_slice %17 {offsets = [6, 0], sizes = [1, 16], strides = [1, 1]} : vector<16x32xf32> to vector<1x16xf32>
    %c12_32 = arith.constant 12 : index
    %c0_33 = arith.constant 0 : index
    %43 = vector.load %arg9[%c12_32, %c0_33] : memref<32x16xf32, #tpu.memory_space<vmem>>, vector<1x16xf32>
    tpu.vector_store %arg9[%c12_32, %c0_33], %42 {strides = array<i32>} : memref<32x16xf32, #tpu.memory_space<vmem>>, vector<1x16xf32>,
    %44 = vector.extract_strided_slice %17 {offsets = [6, 16], sizes = [1, 16], strides = [1, 1]} : vector<16x32xf32> to vector<1x16xf32>
    %c13 = arith.constant 13 : index
    %c0_34 = arith.constant 0 : index
    %45 = vector.load %arg9[%c13, %c0_34] : memref<32x16xf32, #tpu.memory_space<vmem>>, vector<1x16xf32>
    tpu.vector_store %arg9[%c13, %c0_34], %44 {strides = array<i32>} : memref<32x16xf32, #tpu.memory_space<vmem>>, vector<1x16xf32>,
    %46 = vector.extract_strided_slice %17 {offsets = [7, 0], sizes = [1, 16], strides = [1, 1]} : vector<16x32xf32> to vector<1x16xf32>
    %c14 = arith.constant 14 : index
    %c0_35 = arith.constant 0 : index
    %47 = vector.load %arg9[%c14, %c0_35] : memref<32x16xf32, #tpu.memory_space<vmem>>, vector<1x16xf32>
    tpu.vector_store %arg9[%c14, %c0_35], %46 {strides = array<i32>} : memref<32x16xf32, #tpu.memory_space<vmem>>, vector<1x16xf32>,
    %48 = vector.extract_strided_slice %17 {offsets = [7, 16], sizes = [1, 16], strides = [1, 1]} : vector<16x32xf32> to vector<1x16xf32>
    %c15 = arith.constant 15 : index
    %c0_36 = arith.constant 0 : index
    %49 = vector.load %arg9[%c15, %c0_36] : memref<32x16xf32, #tpu.memory_space<vmem>>, vector<1x16xf32>
    tpu.vector_store %arg9[%c15, %c0_36], %48 {strides = array<i32>} : memref<32x16xf32, #tpu.memory_space<vmem>>, vector<1x16xf32>,
    %50 = vector.extract_strided_slice %17 {offsets = [8, 0], sizes = [1, 16], strides = [1, 1]} : vector<16x32xf32> to vector<1x16xf32>
    %c16 = arith.constant 16 : index
    %c0_37 = arith.constant 0 : index
    %51 = vector.load %arg9[%c16, %c0_37] : memref<32x16xf32, #tpu.memory_space<vmem>>, vector<1x16xf32>
    tpu.vector_store %arg9[%c16, %c0_37], %50 {strides = array<i32>} : memref<32x16xf32, #tpu.memory_space<vmem>>, vector<1x16xf32>,
    %52 = vector.extract_strided_slice %17 {offsets = [8, 16], sizes = [1, 16], strides = [1, 1]} : vector<16x32xf32> to vector<1x16xf32>
    %c17 = arith.constant 17 : index
    %c0_38 = arith.constant 0 : index
    %53 = vector.load %arg9[%c17, %c0_38] : memref<32x16xf32, #tpu.memory_space<vmem>>, vector<1x16xf32>
    tpu.vector_store %arg9[%c17, %c0_38], %52 {strides = array<i32>} : memref<32x16xf32, #tpu.memory_space<vmem>>, vector<1x16xf32>,
    %54 = vector.extract_strided_slice %17 {offsets = [9, 0], sizes = [1, 16], strides = [1, 1]} : vector<16x32xf32> to vector<1x16xf32>
    %c18 = arith.constant 18 : index
    %c0_39 = arith.constant 0 : index
    %55 = vector.load %arg9[%c18, %c0_39] : memref<32x16xf32, #tpu.memory_space<vmem>>, vector<1x16xf32>
    tpu.vector_store %arg9[%c18, %c0_39], %54 {strides = array<i32>} : memref<32x16xf32, #tpu.memory_space<vmem>>, vector<1x16xf32>,
    %56 = vector.extract_strided_slice %17 {offsets = [9, 16], sizes = [1, 16], strides = [1, 1]} : vector<16x32xf32> to vector<1x16xf32>
    %c19 = arith.constant 19 : index
    %c0_40 = arith.constant 0 : index
    %57 = vector.load %arg9[%c19, %c0_40] : memref<32x16xf32, #tpu.memory_space<vmem>>, vector<1x16xf32>
    tpu.vector_store %arg9[%c19, %c0_40], %56 {strides = array<i32>} : memref<32x16xf32, #tpu.memory_space<vmem>>, vector<1x16xf32>,
    %58 = vector.extract_strided_slice %17 {offsets = [10, 0], sizes = [1, 16], strides = [1, 1]} : vector<16x32xf32> to vector<1x16xf32>
    %c20 = arith.constant 20 : index
    %c0_41 = arith.constant 0 : index
    %59 = vector.load %arg9[%c20, %c0_41] : memref<32x16xf32, #tpu.memory_space<vmem>>, vector<1x16xf32>
    tpu.vector_store %arg9[%c20, %c0_41], %58 {strides = array<i32>} : memref<32x16xf32, #tpu.memory_space<vmem>>, vector<1x16xf32>,
    %60 = vector.extract_strided_slice %17 {offsets = [10, 16], sizes = [1, 16], strides = [1, 1]} : vector<16x32xf32> to vector<1x16xf32>
    %c21 = arith.constant 21 : index
    %c0_42 = arith.constant 0 : index
    %61 = vector.load %arg9[%c21, %c0_42] : memref<32x16xf32, #tpu.memory_space<vmem>>, vector<1x16xf32>
    tpu.vector_store %arg9[%c21, %c0_42], %60 {strides = array<i32>} : memref<32x16xf32, #tpu.memory_space<vmem>>, vector<1x16xf32>,
    %62 = vector.extract_strided_slice %17 {offsets = [11, 0], sizes = [1, 16], strides = [1, 1]} : vector<16x32xf32> to vector<1x16xf32>
    %c22 = arith.constant 22 : index
    %c0_43 = arith.constant 0 : index
    %63 = vector.load %arg9[%c22, %c0_43] : memref<32x16xf32, #tpu.memory_space<vmem>>, vector<1x16xf32>
    tpu.vector_store %arg9[%c22, %c0_43], %62 {strides = array<i32>} : memref<32x16xf32, #tpu.memory_space<vmem>>, vector<1x16xf32>,
    %64 = vector.extract_strided_slice %17 {offsets = [11, 16], sizes = [1, 16], strides = [1, 1]} : vector<16x32xf32> to vector<1x16xf32>
    %c23 = arith.constant 23 : index
    %c0_44 = arith.constant 0 : index
    %65 = vector.load %arg9[%c23, %c0_44] : memref<32x16xf32, #tpu.memory_space<vmem>>, vector<1x16xf32>
    tpu.vector_store %arg9[%c23, %c0_44], %64 {strides = array<i32>} : memref<32x16xf32, #tpu.memory_space<vmem>>, vector<1x16xf32>,
    %66 = vector.extract_strided_slice %17 {offsets = [12, 0], sizes = [1, 16], strides = [1, 1]} : vector<16x32xf32> to vector<1x16xf32>
    %c24_45 = arith.constant 24 : index
    %c0_46 = arith.constant 0 : index
    %67 = vector.load %arg9[%c24_45, %c0_46] : memref<32x16xf32, #tpu.memory_space<vmem>>, vector<1x16xf32>
    tpu.vector_store %arg9[%c24_45, %c0_46], %66 {strides = array<i32>} : memref<32x16xf32, #tpu.memory_space<vmem>>, vector<1x16xf32>,
    %68 = vector.extract_strided_slice %17 {offsets = [12, 16], sizes = [1, 16], strides = [1, 1]} : vector<16x32xf32> to vector<1x16xf32>
    %c25 = arith.constant 25 : index
    %c0_47 = arith.constant 0 : index
    %69 = vector.load %arg9[%c25, %c0_47] : memref<32x16xf32, #tpu.memory_space<vmem>>, vector<1x16xf32>
    tpu.vector_store %arg9[%c25, %c0_47], %68 {strides = array<i32>} : memref<32x16xf32, #tpu.memory_space<vmem>>, vector<1x16xf32>,
    %70 = vector.extract_strided_slice %17 {offsets = [13, 0], sizes = [1, 16], strides = [1, 1]} : vector<16x32xf32> to vector<1x16xf32>
    %c26 = arith.constant 26 : index
    %c0_48 = arith.constant 0 : index
    %71 = vector.load %arg9[%c26, %c0_48] : memref<32x16xf32, #tpu.memory_space<vmem>>, vector<1x16xf32>
    tpu.vector_store %arg9[%c26, %c0_48], %70 {strides = array<i32>} : memref<32x16xf32, #tpu.memory_space<vmem>>, vector<1x16xf32>,
    %72 = vector.extract_strided_slice %17 {offsets = [13, 16], sizes = [1, 16], strides = [1, 1]} : vector<16x32xf32> to vector<1x16xf32>
    %c27 = arith.constant 27 : index
    %c0_49 = arith.constant 0 : index
    %73 = vector.load %arg9[%c27, %c0_49] : memref<32x16xf32, #tpu.memory_space<vmem>>, vector<1x16xf32>
    tpu.vector_store %arg9[%c27, %c0_49], %72 {strides = array<i32>} : memref<32x16xf32, #tpu.memory_space<vmem>>, vector<1x16xf32>,
    %74 = vector.extract_strided_slice %17 {offsets = [14, 0], sizes = [1, 16], strides = [1, 1]} : vector<16x32xf32> to vector<1x16xf32>
    %c28 = arith.constant 28 : index
    %c0_50 = arith.constant 0 : index
    %75 = vector.load %arg9[%c28, %c0_50] : memref<32x16xf32, #tpu.memory_space<vmem>>, vector<1x16xf32>
    tpu.vector_store %arg9[%c28, %c0_50], %74 {strides = array<i32>} : memref<32x16xf32, #tpu.memory_space<vmem>>, vector<1x16xf32>,
    %76 = vector.extract_strided_slice %17 {offsets = [14, 16], sizes = [1, 16], strides = [1, 1]} : vector<16x32xf32> to vector<1x16xf32>
    %c29 = arith.constant 29 : index
    %c0_51 = arith.constant 0 : index
    %77 = vector.load %arg9[%c29, %c0_51] : memref<32x16xf32, #tpu.memory_space<vmem>>, vector<1x16xf32>
    tpu.vector_store %arg9[%c29, %c0_51], %76 {strides = array<i32>} : memref<32x16xf32, #tpu.memory_space<vmem>>, vector<1x16xf32>,
    %78 = vector.extract_strided_slice %17 {offsets = [15, 0], sizes = [1, 16], strides = [1, 1]} : vector<16x32xf32> to vector<1x16xf32>
    %c30 = arith.constant 30 : index
    %c0_52 = arith.constant 0 : index
    %79 = vector.load %arg9[%c30, %c0_52] : memref<32x16xf32, #tpu.memory_space<vmem>>, vector<1x16xf32>
    tpu.vector_store %arg9[%c30, %c0_52], %78 {strides = array<i32>} : memref<32x16xf32, #tpu.memory_space<vmem>>, vector<1x16xf32>,
    %80 = vector.extract_strided_slice %17 {offsets = [15, 16], sizes = [1, 16], strides = [1, 1]} : vector<16x32xf32> to vector<1x16xf32>
    %c31 = arith.constant 31 : index
    %c0_53 = arith.constant 0 : index
    %81 = vector.load %arg9[%c31, %c0_53] : memref<32x16xf32, #tpu.memory_space<vmem>>, vector<1x16xf32>
    tpu.vector_store %arg9[%c31, %c0_53], %80 {strides = array<i32>} : memref<32x16xf32, #tpu.memory_space<vmem>>, vector<1x16xf32>,
    %c0_54 = arith.constant 0 : index
    %c0_55 = arith.constant 0 : index
    %82 = vector.load %arg9[%c0_54, %c0_55] : memref<32x16xf32, #tpu.memory_space<vmem>>, vector<32x16xf32>
    %c0_56 = arith.constant 0 : index
    %c0_57 = arith.constant 0 : index
    %83 = vector.load %arg5[%c0_56, %c0_57] : memref<32x1xf32, #tpu.memory_space<vmem>>, vector<32x1xf32>
    %84 = vector.broadcast %83 : vector<32x1xf32> to vector<32x16xf32>
    %85 = arith.addf %82, %84 : vector<32x16xf32>
    %86 = vector.extract_strided_slice %85 {offsets = [0, 0], sizes = [8, 16], strides = [1, 1]} : vector<32x16xf32> to vector<8x16xf32>
    %87 = arith.negf %86 : vector<8x16xf32>
    %88 = math.exp %87 : vector<8x16xf32>
    %cst_58 = arith.constant 1.000000e+00 : f32
    %89 = vector.broadcast %cst_58 : f32 to vector<8x16xf32>
    %90 = arith.addf %89, %88 : vector<8x16xf32>
    %91 = arith.divf %89, %90 : vector<8x16xf32>
    %92 = vector.extract_strided_slice %85 {offsets = [8, 0], sizes = [8, 16], strides = [1, 1]} : vector<32x16xf32> to vector<8x16xf32>
    %93 = arith.negf %92 : vector<8x16xf32>
    %94 = math.exp %93 : vector<8x16xf32>
    %cst_59 = arith.constant 1.000000e+00 : f32
    %95 = vector.broadcast %cst_59 : f32 to vector<8x16xf32>
    %96 = arith.addf %95, %94 : vector<8x16xf32>
    %97 = arith.divf %95, %96 : vector<8x16xf32>
    %98 = vector.extract_strided_slice %85 {offsets = [16, 0], sizes = [8, 16], strides = [1, 1]} : vector<32x16xf32> to vector<8x16xf32>
    %99 = arith.negf %98 : vector<8x16xf32>
    %100 = math.exp %99 : vector<8x16xf32>
    %cst_60 = arith.constant 1.000000e+00 : f32
    %101 = vector.broadcast %cst_60 : f32 to vector<8x16xf32>
    %102 = arith.addf %101, %100 : vector<8x16xf32>
    %103 = arith.divf %101, %102 : vector<8x16xf32>
    %104 = vector.extract_strided_slice %85 {offsets = [24, 0], sizes = [8, 16], strides = [1, 1]} : vector<32x16xf32> to vector<8x16xf32>
    %105 = math.tanh %104 : vector<8x16xf32>
    %c0_61 = arith.constant 0 : index
    %c0_62 = arith.constant 0 : index
    %106 = vector.load %arg10[%c0_61, %c0_62] : memref<8x16xf32, #tpu.memory_space<vmem>>, vector<8x16xf32>
    %107 = arith.mulf %97, %106 : vector<8x16xf32>
    %108 = arith.mulf %91, %105 : vector<8x16xf32>
    %109 = arith.addf %107, %108 : vector<8x16xf32>
    %110 = math.tanh %109 : vector<8x16xf32>
    %111 = arith.mulf %103, %110 : vector<8x16xf32>
    %c0_63 = arith.constant 0 : index
    %c0_64 = arith.constant 0 : index
    %c0_65 = arith.constant 0 : index
    %c0_66 = arith.constant 0 : index
    %112 = vector.load %arg6[%c0_63, %c0_64, %c0_65, %c0_66] : memref<1x1x8x16xf32, #tpu.memory_space<vmem>>, vector<1x1x8x16xf32>
    %113 = vector.shape_cast %112 : vector<1x1x8x16xf32> to vector<8x16xf32>
    %114 = vector.shape_cast %111 : vector<8x16xf32> to vector<1x1x8x16xf32>
    tpu.vector_store %arg6[%c0_63, %c0_64, %c0_65, %c0_66], %114 {strides = array<i32>} : memref<1x1x8x16xf32, #tpu.memory_space<vmem>>, vector<1x1x8x16xf32>,
    %c0_67 = arith.constant 0 : index
    %c0_68 = arith.constant 0 : index
    %c0_69 = arith.constant 0 : index
    %115 = vector.load %arg7[%c0_67, %c0_68, %c0_69] : memref<1x8x16xf32, #tpu.memory_space<vmem>>, vector<1x8x16xf32>
    %116 = vector.shape_cast %115 : vector<1x8x16xf32> to vector<8x16xf32>
    %117 = vector.shape_cast %109 : vector<8x16xf32> to vector<1x8x16xf32>
    tpu.vector_store %arg7[%c0_67, %c0_68, %c0_69], %117 {strides = array<i32>} : memref<1x8x16xf32, #tpu.memory_space<vmem>>, vector<1x8x16xf32>,
    %c0_70 = arith.constant 0 : index
    %c0_71 = arith.constant 0 : index
    %118 = vector.load %arg10[%c0_70, %c0_71] : memref<8x16xf32, #tpu.memory_space<vmem>>, vector<8x16xf32>
    tpu.vector_store %arg10[%c0_70, %c0_71], %109 {strides = array<i32>} : memref<8x16xf32, #tpu.memory_space<vmem>>, vector<8x16xf32>,
    %119 = tpu.iota {dimensions = array<i32: 0>} : vector<16x16xi32>
    %120 = tpu.iota {dimensions = array<i32: 1>} : vector<16x16xi32>
    %121 = arith.cmpi eq, %119, %120 : vector<16x16xi32>
    %122 = arith.extui %121 : vector<16x16xi1> to vector<16x16xi32>
    %123 = arith.sitofp %122 : vector<16x16xi32> to vector<16x16xf32>
    %cst_72 = arith.constant dense<0.000000e+00> : vector<16x8xf32>
    %124 = tpu.matmul %123, %111, %cst_72 {dimension_numbers = #tpu.dot_dimension_numbers<[1], [1], [0], [0], [0, 0, 1, 0], [], []>} : vector<16x16xf32>, vector<8x16xf32>, vector<16x8xf32> -> vector<16x8xf32>
    %c0_73 = arith.constant 0 : index
    %c4_74 = arith.constant 4 : index
    %125 = vector.load %arg8[%c0_73, %c4_74] : memref<16x36xf32, #tpu.memory_space<vmem>>, vector<16x8xf32>
    tpu.vector_store %arg8[%c0_73, %c4_74], %124 {strides = array<i32>} : memref<16x36xf32, #tpu.memory_space<vmem>>, vector<16x8xf32>,
    return
  }
  func.func @transform_0(%arg0: i32, %arg1: i32) -> (i32, i32, i32, i32) {
    %c0_i32 = arith.constant 0 : i32
    %c0_i32_0 = arith.constant 0 : i32
    %c0_i32_1 = arith.constant 0 : i32
    return %arg0, %arg1, %c0_i32, %c0_i32_0 : i32, i32, i32, i32
  }
  func.func @transform_1(%arg0: i32, %arg1: i32) -> (i32, i32) {
    %c0_i32 = arith.constant 0 : i32
    %c0_i32_0 = arith.constant 0 : i32
    %c0_i32_1 = arith.constant 0 : i32
    return %c0_i32, %c0_i32_0 : i32, i32
  }
  func.func @transform_2(%arg0: i32, %arg1: i32) -> (i32, i32) {
    %c0_i32 = arith.constant 0 : i32
    %c0_i32_0 = arith.constant 0 : i32
    %c0_i32_1 = arith.constant 0 : i32
    return %c0_i32, %c0_i32_0 : i32, i32
  }
  func.func @transform_3(%arg0: i32, %arg1: i32) -> (i32, i32) {
    %c0_i32 = arith.constant 0 : i32
    %c0_i32_0 = arith.constant 0 : i32
    %c0_i32_1 = arith.constant 0 : i32
    return %c0_i32, %c0_i32_0 : i32, i32
  }
  func.func @transform_4(%arg0: i32, %arg1: i32) -> (i32, i32, i32, i32) {
    %c0_i32 = arith.constant 0 : i32
    %c0_i32_0 = arith.constant 0 : i32
    %c0_i32_1 = arith.constant 0 : i32
    return %arg0, %arg1, %c0_i32, %c0_i32_0 : i32, i32, i32, i32
  }
  func.func @transform_5(%arg0: i32, %arg1: i32) -> (i32, i32, i32) {
    %c0_i32 = arith.constant 0 : i32
    %c0_i32_0 = arith.constant 0 : i32
    %c0_i32_1 = arith.constant 0 : i32
    return %arg0, %c0_i32, %c0_i32_0 : i32, i32, i32
  }
}

module attributes {stable_mosaic.version = 11 : i64} {
  func.func @_convlstm_layer_kernel(%arg0: i32, %arg1: i32, %arg2: memref<1x1x16x8xf32, #tpu.memory_space<vmem>>, %arg3: memref<16x16xf32, #tpu.memory_space<vmem>>, %arg4: memref<48x32xf32, #tpu.memory_space<vmem>>, %arg5: memref<32x1xf32, #tpu.memory_space<vmem>>, %arg6: memref<1x1x8x16xf32, #tpu.memory_space<vmem>>, %arg7: memref<1x8x16xf32, #tpu.memory_space<vmem>>, %arg8: memref<16x48xf32, #tpu.memory_space<vmem>>, %arg9: memref<32x16xf32, #tpu.memory_space<vmem>>, %arg10: memref<8x16xf32, #tpu.memory_space<vmem>>) attributes {dimension_semantics = [#tpu.dimension_semantics<parallel>, #tpu.dimension_semantics<arbitrary>], iteration_bounds = array<i64: 2, 4>, scalar_prefetch = 0 : i64, scratch_operands = 3 : i64, tpu.core_type = #tpu.core_type<tc>, window_params = [{transform_indices = @transform_0, window_bounds = array<i64: 1, 1, 16, 8>}, {pipeline_mode = #tpu.pipeline_mode<synchronous>, transform_indices = @transform_1, window_bounds = array<i64: 16, 16>}, {pipeline_mode = #tpu.pipeline_mode<synchronous>, transform_indices = @transform_2, window_bounds = array<i64: 48, 32>}, {pipeline_mode = #tpu.pipeline_mode<synchronous>, transform_indices = @transform_3, window_bounds = array<i64: 32, 1>}, {transform_indices = @transform_4, window_bounds = array<i64: 1, 1, 8, 16>}, {transform_indices = @transform_5, window_bounds = array<i64: 1, 8, 16>}]} {
    %c0_i32 = arith.constant 0 : i32
    %0 = arith.cmpi eq, %arg1, %c0_i32 : i32
    %1 = arith.extui %0 : i1 to i32
    %c0_i32_0 = arith.constant 0 : i32
    %2 = arith.cmpi ne, %1, %c0_i32_0 : i32
    scf.if %2 {
      %cst_74 = arith.constant 0.000000e+00 : f32
      %126 = vector.broadcast %cst_74 : f32 to vector<16x8xf32>
      %c0_75 = arith.constant 0 : index
      %c8_76 = arith.constant 8 : index
      %127 = vector.load %arg8[%c0_75, %c8_76] : memref<16x48xf32, #tpu.memory_space<vmem>>, vector<16x8xf32>
      tpu.vector_store %arg8[%c0_75, %c8_76], %126 {strides = array<i32>} : memref<16x48xf32, #tpu.memory_space<vmem>>, vector<16x8xf32>,
      %cst_77 = arith.constant 0.000000e+00 : f32
      %128 = vector.broadcast %cst_77 : f32 to vector<8x16xf32>
      %c0_78 = arith.constant 0 : index
      %c0_79 = arith.constant 0 : index
      %129 = vector.load %arg10[%c0_78, %c0_79] : memref<8x16xf32, #tpu.memory_space<vmem>>, vector<8x16xf32>
      tpu.vector_store %arg10[%c0_78, %c0_79], %128 {strides = array<i32>} : memref<8x16xf32, #tpu.memory_space<vmem>>, vector<8x16xf32>,
    } else {
    }
    %c0 = arith.constant 0 : index
    %c0_1 = arith.constant 0 : index
    %c0_2 = arith.constant 0 : index
    %c0_3 = arith.constant 0 : index
    %3 = vector.load %arg2[%c0, %c0_1, %c0_2, %c0_3] : memref<1x1x16x8xf32, #tpu.memory_space<vmem>>, vector<1x1x16x8xf32>
    %4 = vector.shape_cast %3 : vector<1x1x16x8xf32> to vector<16x8xf32>
    %c0_4 = arith.constant 0 : index
    %c0_5 = arith.constant 0 : index
    %5 = vector.load %arg8[%c0_4, %c0_5] : memref<16x48xf32, #tpu.memory_space<vmem>>, vector<16x8xf32>
    tpu.vector_store %arg8[%c0_4, %c0_5], %4 {strides = array<i32>} : memref<16x48xf32, #tpu.memory_space<vmem>>, vector<16x8xf32>,
    %c0_6 = arith.constant 0 : index
    %c0_7 = arith.constant 0 : index
    %6 = vector.load %arg8[%c0_6, %c0_7] : memref<16x48xf32, #tpu.memory_space<vmem>>, vector<16x16xf32>
    %c0_8 = arith.constant 0 : index
    %c0_9 = arith.constant 0 : index
    %7 = vector.load %arg3[%c0_8, %c0_9] : memref<16x16xf32, #tpu.memory_space<vmem>>, vector<16x16xf32>
    %cst = arith.constant dense<0.000000e+00> : vector<16x16xf32>
    %8 = tpu.matmul %7, %6, %cst {dimension_numbers = #tpu.dot_dimension_numbers<[1], [0], [0], [1], [0, 0, 1, 1], [], []>} : vector<16x16xf32>, vector<16x16xf32>, vector<16x16xf32> -> vector<16x16xf32>
    %c0_10 = arith.constant 0 : index
    %c16 = arith.constant 16 : index
    %9 = vector.load %arg8[%c0_10, %c16] : memref<16x48xf32, #tpu.memory_space<vmem>>, vector<16x16xf32>
    tpu.vector_store %arg8[%c0_10, %c16], %8 {strides = array<i32>} : memref<16x48xf32, #tpu.memory_space<vmem>>, vector<16x16xf32>,
    %cst_11 = arith.constant dense<0.000000e+00> : vector<16x16xf32>
    %10 = tpu.matmul %7, %8, %cst_11 {dimension_numbers = #tpu.dot_dimension_numbers<[1], [0], [0], [1], [0, 0, 1, 1], [], []>} : vector<16x16xf32>, vector<16x16xf32>, vector<16x16xf32> -> vector<16x16xf32>
    %cst_12 = arith.constant 2.000000e+00 : f32
    %11 = vector.broadcast %cst_12 : f32 to vector<16x16xf32>
    %12 = arith.mulf %11, %10 : vector<16x16xf32>
    %13 = arith.subf %12, %6 : vector<16x16xf32>
    %c0_13 = arith.constant 0 : index
    %c32 = arith.constant 32 : index
    %14 = vector.load %arg8[%c0_13, %c32] : memref<16x48xf32, #tpu.memory_space<vmem>>, vector<16x16xf32>
    tpu.vector_store %arg8[%c0_13, %c32], %13 {strides = array<i32>} : memref<16x48xf32, #tpu.memory_space<vmem>>, vector<16x16xf32>,
    %c0_14 = arith.constant 0 : index
    %c0_15 = arith.constant 0 : index
    %15 = vector.load %arg8[%c0_14, %c0_15] : memref<16x48xf32, #tpu.memory_space<vmem>>, vector<16x48xf32>
    %c0_16 = arith.constant 0 : index
    %c0_17 = arith.constant 0 : index
    %16 = vector.load %arg4[%c0_16, %c0_17] : memref<48x32xf32, #tpu.memory_space<vmem>>, vector<48x32xf32>
    %cst_18 = arith.constant dense<0.000000e+00> : vector<16x32xf32>
    %17 = tpu.matmul %15, %16, %cst_18 {dimension_numbers = #tpu.dot_dimension_numbers<[1], [0], [0], [1], [0, 0, 1, 1], [], []>} : vector<16x48xf32>, vector<48x32xf32>, vector<16x32xf32> -> vector<16x32xf32>
    %18 = vector.extract_strided_slice %17 {offsets = [0, 0], sizes = [1, 16], strides = [1, 1]} : vector<16x32xf32> to vector<1x16xf32>
    %c0_19 = arith.constant 0 : index
    %c0_20 = arith.constant 0 : index
    %19 = vector.load %arg9[%c0_19, %c0_20] : memref<32x16xf32, #tpu.memory_space<vmem>>, vector<1x16xf32>
    tpu.vector_store %arg9[%c0_19, %c0_20], %18 {strides = array<i32>} : memref<32x16xf32, #tpu.memory_space<vmem>>, vector<1x16xf32>,
    %20 = vector.extract_strided_slice %17 {offsets = [0, 16], sizes = [1, 16], strides = [1, 1]} : vector<16x32xf32> to vector<1x16xf32>
    %c1 = arith.constant 1 : index
    %c0_21 = arith.constant 0 : index
    %21 = vector.load %arg9[%c1, %c0_21] : memref<32x16xf32, #tpu.memory_space<vmem>>, vector<1x16xf32>
    tpu.vector_store %arg9[%c1, %c0_21], %20 {strides = array<i32>} : memref<32x16xf32, #tpu.memory_space<vmem>>, vector<1x16xf32>,
    %22 = vector.extract_strided_slice %17 {offsets = [1, 0], sizes = [1, 16], strides = [1, 1]} : vector<16x32xf32> to vector<1x16xf32>
    %c2 = arith.constant 2 : index
    %c0_22 = arith.constant 0 : index
    %23 = vector.load %arg9[%c2, %c0_22] : memref<32x16xf32, #tpu.memory_space<vmem>>, vector<1x16xf32>
    tpu.vector_store %arg9[%c2, %c0_22], %22 {strides = array<i32>} : memref<32x16xf32, #tpu.memory_space<vmem>>, vector<1x16xf32>,
    %24 = vector.extract_strided_slice %17 {offsets = [1, 16], sizes = [1, 16], strides = [1, 1]} : vector<16x32xf32> to vector<1x16xf32>
    %c3 = arith.constant 3 : index
    %c0_23 = arith.constant 0 : index
    %25 = vector.load %arg9[%c3, %c0_23] : memref<32x16xf32, #tpu.memory_space<vmem>>, vector<1x16xf32>
    tpu.vector_store %arg9[%c3, %c0_23], %24 {strides = array<i32>} : memref<32x16xf32, #tpu.memory_space<vmem>>, vector<1x16xf32>,
    %26 = vector.extract_strided_slice %17 {offsets = [2, 0], sizes = [1, 16], strides = [1, 1]} : vector<16x32xf32> to vector<1x16xf32>
    %c4 = arith.constant 4 : index
    %c0_24 = arith.constant 0 : index
    %27 = vector.load %arg9[%c4, %c0_24] : memref<32x16xf32, #tpu.memory_space<vmem>>, vector<1x16xf32>
    tpu.vector_store %arg9[%c4, %c0_24], %26 {strides = array<i32>} : memref<32x16xf32, #tpu.memory_space<vmem>>, vector<1x16xf32>,
    %28 = vector.extract_strided_slice %17 {offsets = [2, 16], sizes = [1, 16], strides = [1, 1]} : vector<16x32xf32> to vector<1x16xf32>
    %c5 = arith.constant 5 : index
    %c0_25 = arith.constant 0 : index
    %29 = vector.load %arg9[%c5, %c0_25] : memref<32x16xf32, #tpu.memory_space<vmem>>, vector<1x16xf32>
    tpu.vector_store %arg9[%c5, %c0_25], %28 {strides = array<i32>} : memref<32x16xf32, #tpu.memory_space<vmem>>, vector<1x16xf32>,
    %30 = vector.extract_strided_slice %17 {offsets = [3, 0], sizes = [1, 16], strides = [1, 1]} : vector<16x32xf32> to vector<1x16xf32>
    %c6 = arith.constant 6 : index
    %c0_26 = arith.constant 0 : index
    %31 = vector.load %arg9[%c6, %c0_26] : memref<32x16xf32, #tpu.memory_space<vmem>>, vector<1x16xf32>
    tpu.vector_store %arg9[%c6, %c0_26], %30 {strides = array<i32>} : memref<32x16xf32, #tpu.memory_space<vmem>>, vector<1x16xf32>,
    %32 = vector.extract_strided_slice %17 {offsets = [3, 16], sizes = [1, 16], strides = [1, 1]} : vector<16x32xf32> to vector<1x16xf32>
    %c7 = arith.constant 7 : index
    %c0_27 = arith.constant 0 : index
    %33 = vector.load %arg9[%c7, %c0_27] : memref<32x16xf32, #tpu.memory_space<vmem>>, vector<1x16xf32>
    tpu.vector_store %arg9[%c7, %c0_27], %32 {strides = array<i32>} : memref<32x16xf32, #tpu.memory_space<vmem>>, vector<1x16xf32>,
    %34 = vector.extract_strided_slice %17 {offsets = [4, 0], sizes = [1, 16], strides = [1, 1]} : vector<16x32xf32> to vector<1x16xf32>
    %c8 = arith.constant 8 : index
    %c0_28 = arith.constant 0 : index
    %35 = vector.load %arg9[%c8, %c0_28] : memref<32x16xf32, #tpu.memory_space<vmem>>, vector<1x16xf32>
    tpu.vector_store %arg9[%c8, %c0_28], %34 {strides = array<i32>} : memref<32x16xf32, #tpu.memory_space<vmem>>, vector<1x16xf32>,
    %36 = vector.extract_strided_slice %17 {offsets = [4, 16], sizes = [1, 16], strides = [1, 1]} : vector<16x32xf32> to vector<1x16xf32>
    %c9 = arith.constant 9 : index
    %c0_29 = arith.constant 0 : index
    %37 = vector.load %arg9[%c9, %c0_29] : memref<32x16xf32, #tpu.memory_space<vmem>>, vector<1x16xf32>
    tpu.vector_store %arg9[%c9, %c0_29], %36 {strides = array<i32>} : memref<32x16xf32, #tpu.memory_space<vmem>>, vector<1x16xf32>,
    %38 = vector.extract_strided_slice %17 {offsets = [5, 0], sizes = [1, 16], strides = [1, 1]} : vector<16x32xf32> to vector<1x16xf32>
    %c10 = arith.constant 10 : index
    %c0_30 = arith.constant 0 : index
    %39 = vector.load %arg9[%c10, %c0_30] : memref<32x16xf32, #tpu.memory_space<vmem>>, vector<1x16xf32>
    tpu.vector_store %arg9[%c10, %c0_30], %38 {strides = array<i32>} : memref<32x16xf32, #tpu.memory_space<vmem>>, vector<1x16xf32>,
    %40 = vector.extract_strided_slice %17 {offsets = [5, 16], sizes = [1, 16], strides = [1, 1]} : vector<16x32xf32> to vector<1x16xf32>
    %c11 = arith.constant 11 : index
    %c0_31 = arith.constant 0 : index
    %41 = vector.load %arg9[%c11, %c0_31] : memref<32x16xf32, #tpu.memory_space<vmem>>, vector<1x16xf32>
    tpu.vector_store %arg9[%c11, %c0_31], %40 {strides = array<i32>} : memref<32x16xf32, #tpu.memory_space<vmem>>, vector<1x16xf32>,
    %42 = vector.extract_strided_slice %17 {offsets = [6, 0], sizes = [1, 16], strides = [1, 1]} : vector<16x32xf32> to vector<1x16xf32>
    %c12 = arith.constant 12 : index
    %c0_32 = arith.constant 0 : index
    %43 = vector.load %arg9[%c12, %c0_32] : memref<32x16xf32, #tpu.memory_space<vmem>>, vector<1x16xf32>
    tpu.vector_store %arg9[%c12, %c0_32], %42 {strides = array<i32>} : memref<32x16xf32, #tpu.memory_space<vmem>>, vector<1x16xf32>,
    %44 = vector.extract_strided_slice %17 {offsets = [6, 16], sizes = [1, 16], strides = [1, 1]} : vector<16x32xf32> to vector<1x16xf32>
    %c13 = arith.constant 13 : index
    %c0_33 = arith.constant 0 : index
    %45 = vector.load %arg9[%c13, %c0_33] : memref<32x16xf32, #tpu.memory_space<vmem>>, vector<1x16xf32>
    tpu.vector_store %arg9[%c13, %c0_33], %44 {strides = array<i32>} : memref<32x16xf32, #tpu.memory_space<vmem>>, vector<1x16xf32>,
    %46 = vector.extract_strided_slice %17 {offsets = [7, 0], sizes = [1, 16], strides = [1, 1]} : vector<16x32xf32> to vector<1x16xf32>
    %c14 = arith.constant 14 : index
    %c0_34 = arith.constant 0 : index
    %47 = vector.load %arg9[%c14, %c0_34] : memref<32x16xf32, #tpu.memory_space<vmem>>, vector<1x16xf32>
    tpu.vector_store %arg9[%c14, %c0_34], %46 {strides = array<i32>} : memref<32x16xf32, #tpu.memory_space<vmem>>, vector<1x16xf32>,
    %48 = vector.extract_strided_slice %17 {offsets = [7, 16], sizes = [1, 16], strides = [1, 1]} : vector<16x32xf32> to vector<1x16xf32>
    %c15 = arith.constant 15 : index
    %c0_35 = arith.constant 0 : index
    %49 = vector.load %arg9[%c15, %c0_35] : memref<32x16xf32, #tpu.memory_space<vmem>>, vector<1x16xf32>
    tpu.vector_store %arg9[%c15, %c0_35], %48 {strides = array<i32>} : memref<32x16xf32, #tpu.memory_space<vmem>>, vector<1x16xf32>,
    %50 = vector.extract_strided_slice %17 {offsets = [8, 0], sizes = [1, 16], strides = [1, 1]} : vector<16x32xf32> to vector<1x16xf32>
    %c16_36 = arith.constant 16 : index
    %c0_37 = arith.constant 0 : index
    %51 = vector.load %arg9[%c16_36, %c0_37] : memref<32x16xf32, #tpu.memory_space<vmem>>, vector<1x16xf32>
    tpu.vector_store %arg9[%c16_36, %c0_37], %50 {strides = array<i32>} : memref<32x16xf32, #tpu.memory_space<vmem>>, vector<1x16xf32>,
    %52 = vector.extract_strided_slice %17 {offsets = [8, 16], sizes = [1, 16], strides = [1, 1]} : vector<16x32xf32> to vector<1x16xf32>
    %c17 = arith.constant 17 : index
    %c0_38 = arith.constant 0 : index
    %53 = vector.load %arg9[%c17, %c0_38] : memref<32x16xf32, #tpu.memory_space<vmem>>, vector<1x16xf32>
    tpu.vector_store %arg9[%c17, %c0_38], %52 {strides = array<i32>} : memref<32x16xf32, #tpu.memory_space<vmem>>, vector<1x16xf32>,
    %54 = vector.extract_strided_slice %17 {offsets = [9, 0], sizes = [1, 16], strides = [1, 1]} : vector<16x32xf32> to vector<1x16xf32>
    %c18 = arith.constant 18 : index
    %c0_39 = arith.constant 0 : index
    %55 = vector.load %arg9[%c18, %c0_39] : memref<32x16xf32, #tpu.memory_space<vmem>>, vector<1x16xf32>
    tpu.vector_store %arg9[%c18, %c0_39], %54 {strides = array<i32>} : memref<32x16xf32, #tpu.memory_space<vmem>>, vector<1x16xf32>,
    %56 = vector.extract_strided_slice %17 {offsets = [9, 16], sizes = [1, 16], strides = [1, 1]} : vector<16x32xf32> to vector<1x16xf32>
    %c19 = arith.constant 19 : index
    %c0_40 = arith.constant 0 : index
    %57 = vector.load %arg9[%c19, %c0_40] : memref<32x16xf32, #tpu.memory_space<vmem>>, vector<1x16xf32>
    tpu.vector_store %arg9[%c19, %c0_40], %56 {strides = array<i32>} : memref<32x16xf32, #tpu.memory_space<vmem>>, vector<1x16xf32>,
    %58 = vector.extract_strided_slice %17 {offsets = [10, 0], sizes = [1, 16], strides = [1, 1]} : vector<16x32xf32> to vector<1x16xf32>
    %c20 = arith.constant 20 : index
    %c0_41 = arith.constant 0 : index
    %59 = vector.load %arg9[%c20, %c0_41] : memref<32x16xf32, #tpu.memory_space<vmem>>, vector<1x16xf32>
    tpu.vector_store %arg9[%c20, %c0_41], %58 {strides = array<i32>} : memref<32x16xf32, #tpu.memory_space<vmem>>, vector<1x16xf32>,
    %60 = vector.extract_strided_slice %17 {offsets = [10, 16], sizes = [1, 16], strides = [1, 1]} : vector<16x32xf32> to vector<1x16xf32>
    %c21 = arith.constant 21 : index
    %c0_42 = arith.constant 0 : index
    %61 = vector.load %arg9[%c21, %c0_42] : memref<32x16xf32, #tpu.memory_space<vmem>>, vector<1x16xf32>
    tpu.vector_store %arg9[%c21, %c0_42], %60 {strides = array<i32>} : memref<32x16xf32, #tpu.memory_space<vmem>>, vector<1x16xf32>,
    %62 = vector.extract_strided_slice %17 {offsets = [11, 0], sizes = [1, 16], strides = [1, 1]} : vector<16x32xf32> to vector<1x16xf32>
    %c22 = arith.constant 22 : index
    %c0_43 = arith.constant 0 : index
    %63 = vector.load %arg9[%c22, %c0_43] : memref<32x16xf32, #tpu.memory_space<vmem>>, vector<1x16xf32>
    tpu.vector_store %arg9[%c22, %c0_43], %62 {strides = array<i32>} : memref<32x16xf32, #tpu.memory_space<vmem>>, vector<1x16xf32>,
    %64 = vector.extract_strided_slice %17 {offsets = [11, 16], sizes = [1, 16], strides = [1, 1]} : vector<16x32xf32> to vector<1x16xf32>
    %c23 = arith.constant 23 : index
    %c0_44 = arith.constant 0 : index
    %65 = vector.load %arg9[%c23, %c0_44] : memref<32x16xf32, #tpu.memory_space<vmem>>, vector<1x16xf32>
    tpu.vector_store %arg9[%c23, %c0_44], %64 {strides = array<i32>} : memref<32x16xf32, #tpu.memory_space<vmem>>, vector<1x16xf32>,
    %66 = vector.extract_strided_slice %17 {offsets = [12, 0], sizes = [1, 16], strides = [1, 1]} : vector<16x32xf32> to vector<1x16xf32>
    %c24 = arith.constant 24 : index
    %c0_45 = arith.constant 0 : index
    %67 = vector.load %arg9[%c24, %c0_45] : memref<32x16xf32, #tpu.memory_space<vmem>>, vector<1x16xf32>
    tpu.vector_store %arg9[%c24, %c0_45], %66 {strides = array<i32>} : memref<32x16xf32, #tpu.memory_space<vmem>>, vector<1x16xf32>,
    %68 = vector.extract_strided_slice %17 {offsets = [12, 16], sizes = [1, 16], strides = [1, 1]} : vector<16x32xf32> to vector<1x16xf32>
    %c25 = arith.constant 25 : index
    %c0_46 = arith.constant 0 : index
    %69 = vector.load %arg9[%c25, %c0_46] : memref<32x16xf32, #tpu.memory_space<vmem>>, vector<1x16xf32>
    tpu.vector_store %arg9[%c25, %c0_46], %68 {strides = array<i32>} : memref<32x16xf32, #tpu.memory_space<vmem>>, vector<1x16xf32>,
    %70 = vector.extract_strided_slice %17 {offsets = [13, 0], sizes = [1, 16], strides = [1, 1]} : vector<16x32xf32> to vector<1x16xf32>
    %c26 = arith.constant 26 : index
    %c0_47 = arith.constant 0 : index
    %71 = vector.load %arg9[%c26, %c0_47] : memref<32x16xf32, #tpu.memory_space<vmem>>, vector<1x16xf32>
    tpu.vector_store %arg9[%c26, %c0_47], %70 {strides = array<i32>} : memref<32x16xf32, #tpu.memory_space<vmem>>, vector<1x16xf32>,
    %72 = vector.extract_strided_slice %17 {offsets = [13, 16], sizes = [1, 16], strides = [1, 1]} : vector<16x32xf32> to vector<1x16xf32>
    %c27 = arith.constant 27 : index
    %c0_48 = arith.constant 0 : index
    %73 = vector.load %arg9[%c27, %c0_48] : memref<32x16xf32, #tpu.memory_space<vmem>>, vector<1x16xf32>
    tpu.vector_store %arg9[%c27, %c0_48], %72 {strides = array<i32>} : memref<32x16xf32, #tpu.memory_space<vmem>>, vector<1x16xf32>,
    %74 = vector.extract_strided_slice %17 {offsets = [14, 0], sizes = [1, 16], strides = [1, 1]} : vector<16x32xf32> to vector<1x16xf32>
    %c28 = arith.constant 28 : index
    %c0_49 = arith.constant 0 : index
    %75 = vector.load %arg9[%c28, %c0_49] : memref<32x16xf32, #tpu.memory_space<vmem>>, vector<1x16xf32>
    tpu.vector_store %arg9[%c28, %c0_49], %74 {strides = array<i32>} : memref<32x16xf32, #tpu.memory_space<vmem>>, vector<1x16xf32>,
    %76 = vector.extract_strided_slice %17 {offsets = [14, 16], sizes = [1, 16], strides = [1, 1]} : vector<16x32xf32> to vector<1x16xf32>
    %c29 = arith.constant 29 : index
    %c0_50 = arith.constant 0 : index
    %77 = vector.load %arg9[%c29, %c0_50] : memref<32x16xf32, #tpu.memory_space<vmem>>, vector<1x16xf32>
    tpu.vector_store %arg9[%c29, %c0_50], %76 {strides = array<i32>} : memref<32x16xf32, #tpu.memory_space<vmem>>, vector<1x16xf32>,
    %78 = vector.extract_strided_slice %17 {offsets = [15, 0], sizes = [1, 16], strides = [1, 1]} : vector<16x32xf32> to vector<1x16xf32>
    %c30 = arith.constant 30 : index
    %c0_51 = arith.constant 0 : index
    %79 = vector.load %arg9[%c30, %c0_51] : memref<32x16xf32, #tpu.memory_space<vmem>>, vector<1x16xf32>
    tpu.vector_store %arg9[%c30, %c0_51], %78 {strides = array<i32>} : memref<32x16xf32, #tpu.memory_space<vmem>>, vector<1x16xf32>,
    %80 = vector.extract_strided_slice %17 {offsets = [15, 16], sizes = [1, 16], strides = [1, 1]} : vector<16x32xf32> to vector<1x16xf32>
    %c31 = arith.constant 31 : index
    %c0_52 = arith.constant 0 : index
    %81 = vector.load %arg9[%c31, %c0_52] : memref<32x16xf32, #tpu.memory_space<vmem>>, vector<1x16xf32>
    tpu.vector_store %arg9[%c31, %c0_52], %80 {strides = array<i32>} : memref<32x16xf32, #tpu.memory_space<vmem>>, vector<1x16xf32>,
    %c0_53 = arith.constant 0 : index
    %c0_54 = arith.constant 0 : index
    %82 = vector.load %arg9[%c0_53, %c0_54] : memref<32x16xf32, #tpu.memory_space<vmem>>, vector<32x16xf32>
    %c0_55 = arith.constant 0 : index
    %c0_56 = arith.constant 0 : index
    %83 = vector.load %arg5[%c0_55, %c0_56] : memref<32x1xf32, #tpu.memory_space<vmem>>, vector<32x1xf32>
    %84 = vector.broadcast %83 : vector<32x1xf32> to vector<32x16xf32>
    %85 = arith.addf %82, %84 : vector<32x16xf32>
    %86 = vector.extract_strided_slice %85 {offsets = [0, 0], sizes = [8, 16], strides = [1, 1]} : vector<32x16xf32> to vector<8x16xf32>
    %87 = arith.negf %86 : vector<8x16xf32>
    %88 = math.exp %87 : vector<8x16xf32>
    %cst_57 = arith.constant 1.000000e+00 : f32
    %89 = vector.broadcast %cst_57 : f32 to vector<8x16xf32>
    %90 = arith.addf %89, %88 : vector<8x16xf32>
    %91 = arith.divf %89, %90 : vector<8x16xf32>
    %92 = vector.extract_strided_slice %85 {offsets = [8, 0], sizes = [8, 16], strides = [1, 1]} : vector<32x16xf32> to vector<8x16xf32>
    %93 = arith.negf %92 : vector<8x16xf32>
    %94 = math.exp %93 : vector<8x16xf32>
    %cst_58 = arith.constant 1.000000e+00 : f32
    %95 = vector.broadcast %cst_58 : f32 to vector<8x16xf32>
    %96 = arith.addf %95, %94 : vector<8x16xf32>
    %97 = arith.divf %95, %96 : vector<8x16xf32>
    %98 = vector.extract_strided_slice %85 {offsets = [16, 0], sizes = [8, 16], strides = [1, 1]} : vector<32x16xf32> to vector<8x16xf32>
    %99 = arith.negf %98 : vector<8x16xf32>
    %100 = math.exp %99 : vector<8x16xf32>
    %cst_59 = arith.constant 1.000000e+00 : f32
    %101 = vector.broadcast %cst_59 : f32 to vector<8x16xf32>
    %102 = arith.addf %101, %100 : vector<8x16xf32>
    %103 = arith.divf %101, %102 : vector<8x16xf32>
    %104 = vector.extract_strided_slice %85 {offsets = [24, 0], sizes = [8, 16], strides = [1, 1]} : vector<32x16xf32> to vector<8x16xf32>
    %105 = math.tanh %104 : vector<8x16xf32>
    %c0_60 = arith.constant 0 : index
    %c0_61 = arith.constant 0 : index
    %106 = vector.load %arg10[%c0_60, %c0_61] : memref<8x16xf32, #tpu.memory_space<vmem>>, vector<8x16xf32>
    %107 = arith.mulf %97, %106 : vector<8x16xf32>
    %108 = arith.mulf %91, %105 : vector<8x16xf32>
    %109 = arith.addf %107, %108 : vector<8x16xf32>
    %110 = math.tanh %109 : vector<8x16xf32>
    %111 = arith.mulf %103, %110 : vector<8x16xf32>
    %c0_62 = arith.constant 0 : index
    %c0_63 = arith.constant 0 : index
    %c0_64 = arith.constant 0 : index
    %c0_65 = arith.constant 0 : index
    %112 = vector.load %arg6[%c0_62, %c0_63, %c0_64, %c0_65] : memref<1x1x8x16xf32, #tpu.memory_space<vmem>>, vector<1x1x8x16xf32>
    %113 = vector.shape_cast %112 : vector<1x1x8x16xf32> to vector<8x16xf32>
    %114 = vector.shape_cast %111 : vector<8x16xf32> to vector<1x1x8x16xf32>
    tpu.vector_store %arg6[%c0_62, %c0_63, %c0_64, %c0_65], %114 {strides = array<i32>} : memref<1x1x8x16xf32, #tpu.memory_space<vmem>>, vector<1x1x8x16xf32>,
    %c0_66 = arith.constant 0 : index
    %c0_67 = arith.constant 0 : index
    %c0_68 = arith.constant 0 : index
    %115 = vector.load %arg7[%c0_66, %c0_67, %c0_68] : memref<1x8x16xf32, #tpu.memory_space<vmem>>, vector<1x8x16xf32>
    %116 = vector.shape_cast %115 : vector<1x8x16xf32> to vector<8x16xf32>
    %117 = vector.shape_cast %109 : vector<8x16xf32> to vector<1x8x16xf32>
    tpu.vector_store %arg7[%c0_66, %c0_67, %c0_68], %117 {strides = array<i32>} : memref<1x8x16xf32, #tpu.memory_space<vmem>>, vector<1x8x16xf32>,
    %c0_69 = arith.constant 0 : index
    %c0_70 = arith.constant 0 : index
    %118 = vector.load %arg10[%c0_69, %c0_70] : memref<8x16xf32, #tpu.memory_space<vmem>>, vector<8x16xf32>
    tpu.vector_store %arg10[%c0_69, %c0_70], %109 {strides = array<i32>} : memref<8x16xf32, #tpu.memory_space<vmem>>, vector<8x16xf32>,
    %119 = tpu.iota {dimensions = array<i32: 0>} : vector<16x16xi32>
    %120 = tpu.iota {dimensions = array<i32: 1>} : vector<16x16xi32>
    %121 = arith.cmpi eq, %119, %120 : vector<16x16xi32>
    %122 = arith.extui %121 : vector<16x16xi1> to vector<16x16xi32>
    %123 = arith.sitofp %122 : vector<16x16xi32> to vector<16x16xf32>
    %cst_71 = arith.constant dense<0.000000e+00> : vector<16x8xf32>
    %124 = tpu.matmul %123, %111, %cst_71 {dimension_numbers = #tpu.dot_dimension_numbers<[1], [1], [0], [0], [0, 0, 1, 0], [], []>} : vector<16x16xf32>, vector<8x16xf32>, vector<16x8xf32> -> vector<16x8xf32>
    %c0_72 = arith.constant 0 : index
    %c8_73 = arith.constant 8 : index
    %125 = vector.load %arg8[%c0_72, %c8_73] : memref<16x48xf32, #tpu.memory_space<vmem>>, vector<16x8xf32>
    tpu.vector_store %arg8[%c0_72, %c8_73], %124 {strides = array<i32>} : memref<16x48xf32, #tpu.memory_space<vmem>>, vector<16x8xf32>,
    return
  }
  func.func @transform_0(%arg0: i32, %arg1: i32) -> (i32, i32, i32, i32) {
    %c0_i32 = arith.constant 0 : i32
    %c0_i32_0 = arith.constant 0 : i32
    %c0_i32_1 = arith.constant 0 : i32
    return %arg0, %arg1, %c0_i32, %c0_i32_0 : i32, i32, i32, i32
  }
  func.func @transform_1(%arg0: i32, %arg1: i32) -> (i32, i32) {
    %c0_i32 = arith.constant 0 : i32
    %c0_i32_0 = arith.constant 0 : i32
    %c0_i32_1 = arith.constant 0 : i32
    return %c0_i32, %c0_i32_0 : i32, i32
  }
  func.func @transform_2(%arg0: i32, %arg1: i32) -> (i32, i32) {
    %c0_i32 = arith.constant 0 : i32
    %c0_i32_0 = arith.constant 0 : i32
    %c0_i32_1 = arith.constant 0 : i32
    return %c0_i32, %c0_i32_0 : i32, i32
  }
  func.func @transform_3(%arg0: i32, %arg1: i32) -> (i32, i32) {
    %c0_i32 = arith.constant 0 : i32
    %c0_i32_0 = arith.constant 0 : i32
    %c0_i32_1 = arith.constant 0 : i32
    return %c0_i32, %c0_i32_0 : i32, i32
  }
  func.func @transform_4(%arg0: i32, %arg1: i32) -> (i32, i32, i32, i32) {
    %c0_i32 = arith.constant 0 : i32
    %c0_i32_0 = arith.constant 0 : i32
    %c0_i32_1 = arith.constant 0 : i32
    return %arg0, %arg1, %c0_i32, %c0_i32_0 : i32, i32, i32, i32
  }
  func.func @transform_5(%arg0: i32, %arg1: i32) -> (i32, i32, i32) {
    %c0_i32 = arith.constant 0 : i32
    %c0_i32_0 = arith.constant 0 : i32
    %c0_i32_1 = arith.constant 0 : i32
    return %arg0, %c0_i32, %c0_i32_0 : i32, i32, i32
  }
}

</mosaic_0001>

<bundles_post_ra>
// kernel: _lambda_.2
= control target key start
LH: loop header
LB: loop body
LE: loop exit
PB: predicated region body
PF: predicated region fallthrough
CT: control target
= control target key end

     0   :  { %11 = vsyncpa [#allocation6], 0  ;;  %s1470_s0 = inlined_call_operand.vmem [shape: f32[2,4,16,4], index: 0, kind: input, shape index: {}]   ;;  %s1471_s1 = inlined_call_operand.vmem [shape: f32[16,16], index: 1, kind: input, shape index: {}]   ;;  %s1472_s2 = inlined_call_operand.vmem [shape: f32[36,32], index: 2, kind: input, shape index: {}]   ;;  %s1473_s3 = inlined_call_operand.vmem [shape: f32[32,1], index: 3, kind: input, shape index: {}]   ;;  %s1474_s4 = inlined_call_operand.vmem [shape: f32[2,4,8,16], index: 4, kind: output, shape index: {0}]   ;;  %s1475_s5 = inlined_call_operand.hbm [shape: f32[2,8,16], index: 5, kind: output, shape index: {1}]  }
   0x1   :  { %13 = vsyncpa [#allocation6 + $0x1], 0  ;;  %s1245_s18 = smov 0   ;;  %s1247_s19 = smov 0  }
   0x2   :  { %s1249_s20 = smov 0   ;;  %s1251_s21 = smov 0  }
   0x3   :  { %s1253_s22 = smov 0   ;;  %s1255_s23 = smov 0  }
   0x4   :  { %s1257_s24 = smov 0   ;;  %s1259_s25 = smov 0  }
   0x5 LB: > { %1480 = sst [smem:[#allocation8_spill]] %s1197_s23  ;;  %s918_s26 = sadd.s32 4294967295, %s1205_s25   ;;  %s1205_s25 = sphi %s1259_s25, %s19_s25   ;;  %s1201_s24 = sphi %s1257_s24, %s1492_s24   ;;  %s1197_s23 = sphi %s1255_s23, %s1491_s23   ;;  %s1193_s22 = sphi %s1253_s22, %s1490_s22   ;;  %s1189_s21 = sphi %s1251_s21, %s1489_s21   ;;  %s1185_s20 = sphi %s1249_s20, %s1495_s20   ;;  %s1181_s19 = sphi %s1247_s19, %s1494_s19   ;;  %s1177_s18 = sphi %s1245_s18, %s1493_s18  }
   0x6   : > { %1481 = sst [smem:[#allocation9_spill]] %s1201_s24  ;;  %s919_s27 = sadd.s32 4294967294, %s1205_s25  }
   0x7   : > { %s28_s28 = sadd.s32 1, %s1197_s23  ;;  %s31_s29 = sadd.s32 1, %s1201_s24 }
   0x8   : > { %p29_p0 = scmp.ge.s32.totalorder %s28_s28, 4  ;;  %p167_p1 = scmp.ne.s32.totalorder %s1185_s20, %s1181_s19 }
   0x9   : > { %p168_p2 = scmp.eq.s32.totalorder %s918_s26, 7  ;;  %p173_p4 = scmp.ne.s32.totalorder %s1181_s19, %s1177_s18 }
   0xa   : > { %s1497_s28 = smov (%p29_p0, %s28_s28), 0  ;;  %s1499_s29 = smov (!%p29_p0, %s31_s29), %s1201_s24 }
   0xb   : > { %1482 = sst [smem:[#allocation10_spill]] %s1497_s28  ;;  %p1294_p3 = por %p168_p2, %p167_p1 }
   0xc   : > { %p33_p5 = scmp.ge.s32.totalorder %s1499_s29, 2  ;;  %p174_p6 = scmp.eq.s32.totalorder %s919_s27, 7 }
   0xd   : > { %p922_p7 = scmp.ge.s32.totalorder %s1205_s25, 1  ;;  %p213_p8 = scmp.lt.s32.totalorder %s1205_s25, 9 }
   0xe   : > { %s1501_s29 = smov (%p33_p5, %s1499_s29), 0  ;;  %p1304_p9 = por %p174_p6, %p173_p4 }
   0xf   : > { %1484 = sst [smem:[#allocation11_spill]] %s1501_s29  ;;  %p214_p10 = pnand %p922_p7, %p213_p8 }
  0x10   : > { %s154_s7 = ssub.s32 %s1201_s24, %s1501_s29  ;;  %s157_s8 = sadd.s32 1, %s1185_s20 }
  0x11   : > { %p155_p11 = scmp.eq.s32.totalorder %s154_s7, 0  ;;  %217 = sbr.rel (%p214_p10) target bundleno = 1338 (0x53a), region = 36 }
  0x12   : > { %s1479_s10 = sand.u32 (!%p214_p10), 1, %s1181_s19   ;;  %p253_p12 = scmp.lt.s32.totalorder (!%p214_p10), %s1193_s22, 1 }
  0x13   : > { %s1312_s9 = scalar_select %p155_p11, %s1185_s20, %s157_s8  }
  0x14   : > { %s1318_s11 = sshll.u32 (!%p214_p10), %s1479_s10, 3  ;;  %p255_p13 = scmp.lt.s32.totalorder (!%p214_p10), %s1189_s21, 3 }
  0x15   : > { %1486 = sst [smem:[#allocation12_spill]] %s1312_s9  ;;  %s252_s9 = scalar_lea.vmem (!%p214_p10), [#allocation5], %s1318_s11 }
  0x16   : > { %p929_p0 = scmp.ne.s32.totalorder (!%p214_p10), %s1189_s21, 0 }
  0x18   : > { %s254_s12 = scalar_select %p253_p12, %s1193_s22, 1 }
  0x19   : > { %s256_s13 = scalar_select %p255_p13, %s1189_s21, 3 }
  0x1a   : > { %s925_s14 = sshll.u32 %s254_s12, 3  ;;  %s927_s15 = sshll.u32 %s254_s12, 2  ;;  %vm274_vm0 = vcmask (!%p929_p0), 97312   ;;  %vm277_vm1 = vcmask (!%p929_p0), 130048   ;;  %v1207_v0 = vmov (!%p929_p0), 0.0  }
  0x1b   : > { %s924_s16 = sshll.u32 %s256_s13, 1  ;;  %s267_s17 = sadd.s32 %s927_s15, %s256_s13  ;;  %275 = vst.msk [vmem:[#allocation2] sm:$0xff] (!%p929_p0), %vm274_vm0, %v1207_v0  ;;  %276 = vst.msk [vmem:[#allocation2 + $0x8] sm:$0xff] (!%p929_p0), %vm274_vm0, %v1207_v0 }
  0x1c   : > { %s259_s26 = sadd.s32 %s925_s14, %s924_s16  ;;  %s928_s27 = sshll.u32 %s267_s17, 3  ;;  %278 = vst.msk [vmem:[#allocation4] sm:$0xff] (!%p929_p0), %vm277_vm1, %v1207_v0 }
  0x1d   : > { %s926_s7 = sshll.u32 %s259_s26, 3  ;;  %s1326_s28 = scalar_lea.vmem %s1474_s4, %s928_s27 }
  0x1e   : > { %s261_s10 = scalar_lea.vmem %s1470_s0, %s926_s7  ;;  %273 = sbr.rel (%p929_p0) target bundleno = 37 (0x25), region = 40 }
  0x25 PF: > { %v279_v1 = vld [vmem:[%s261_s10] sm:$0xff]  ;;  %v280_v2 = vld [vmem:[%s261_s10 + $0x8] sm:$0xff]  ;;  %vm281_vm2 = vcmask 31744   ;;  %vm288_vm3 = vcmask 130048   ;;  %s1208_s24 = smov 12   ;;  %vm378_vm4 = vcmask 195680   ;;  %v672_v37 = vlaneseq }
  0x26   : > { %v286_v3 = vld [vmem:[%s1471_s1] sm:$0xff]  ;;  %282 = vst.msk [vmem:[#allocation2] sm:$0xff] %vm281_vm2, %v279_v1  ;;  %283 = vst.msk [vmem:[#allocation2 + $0x8] sm:$0xff] %vm281_vm2, %v280_v2  ;;  %v287_v7 = vld [vmem:[%s1471_s1 + $0x8] sm:$0xff]  ;;  %vm485_vm5 = vcmask 1043456   ;;  %s1209_s29 = smov 24  }
  0x27   : > { %971 = vmatprep.mubr.msk.f32.mxu1 %vm288_vm3, %v286_v3  ;;  %v473_v13 = vld [vmem:[%s1472_s2] sm:$0xff]  ;;  %v474_v14 = vld [vmem:[%s1472_s2 + $0x8] sm:$0xff]  ;;  %v475_v16 = vld [vmem:[%s1472_s2 + $0x10] sm:$0xff]  ;;  %v1210_v25 = vmov 0   ;;  %vm468_vm6 = vcmask 294080   ;;  %vm478_vm7 = vcmask 293888  }
  0x28   : > { %v1007_v15 = vpack.c.bf16 %v474_v14, %v473_v13  ;;  %v476_v17 = vld [vmem:[%s1472_s2 + $0x18] sm:$0xff]  ;;  %v477_v21 = vld [vmem:[%s1472_s2 + $0x20] sm:$0xf]  ;;  %1094 = vset.pattern.permute.xlu0 %v1210_v25  ;;  %1093 = vset.pattern.permute.xlu1 %v1210_v25  ;;  %vm564_vm8 = vcmask 122880   ;;  %vm571_vm9 = vcmask 123905   ;;  %vm574_vm10 = vcmask 124930  }
  0x29   : > { %v1011_v18 = vpack.c.bf16 %v476_v17, %v475_v16  ;;  %v616_v27 = vld [vmem:[%s1473_s3] sm:$0xff]  ;;  %vm577_vm11 = vcmask 125955   ;;  %vm580_vm12 = vcmask 126980   ;;  %vm583_vm13 = vcmask 128005   ;;  %s1211_s23 = smov 112   ;;  %v618_v34 = vld [vmem:[%s1473_s3 + $0x10] sm:$0xff] }
  0x2a   : > { %1008 = vmatprep.subr.bf16.mxu0 %v1007_v15  ;;  %vm586_vm14 = vcmask 129030   ;;  %vm589_vm15 = vcmask 130055   ;;  %v617_v35 = vld [vmem:[%s1473_s3 + $0x8] sm:$0xff]  ;;  %v619_v36 = vld [vmem:[%s1473_s3 + $0x18] sm:$0xff]  ;;  %v673_v38 = vshrl.u32 %v672_v37, 7  ;;  %v676_v39 = vand.u32 127, %v672_v37 }
  0x2b   : > { %1010 = vmatpush3.bf16.msra.mxu0 %v1007_v15  ;;  %v1212_v41 = vmov 0.0   ;;  %s946_s17 = sshll.u32 %s1193_s22, 7  ;;  %s803_s26 = sshll.u32 %s252_s9, 4  ;;  %s804_s26 = int_to_ptr.vmem [resolvable:$true] %s803_s26 }
  0x2c   : > { %1012 = vmatprep.subr.bf16.mxu0 %v1011_v18  ;;  %v674_v40 = vadd.s32 8, %v673_v38  ;;  %vm677_vm0 = vcmp.eq.s32.totalorder %v673_v38, %v676_v39  ;;  %s1421_s8 = scalar_lea.hbm %s1475_s5, %s946_s17  ;;  %s1111_s21 = scalar_lea.vmem %s804_s26, 128 }
  0x2d   : > { %v284_v4 = vld [vmem:[#allocation2] sm:$0xff]  ;;  %v285_v5 = vld [vmem:[#allocation2 + $0x8] sm:$0xff]  ;;  %v940_v42 = vsel %vm677_vm0, 1.0, %v1212_v41  ;;  %p1112_p1 = scmp.ne.s32.totalorder %s804_s26, %s1111_s21 }
  0x2e   : > { %v999_v6 = vpack.c.bf16 %v285_v5, %v284_v4  ;;  %vm678_vm1 = vcmp.eq.s32.totalorder %v674_v40, %v676_v39 }
  0x2f   : > { %1014 = vmatpush3.bf16.msra.mxu0 %v1011_v18  ;;  %v1386_v43 = vsel %vm678_vm1, 1.0, %v1212_v41  ;;  %p1113_p2 = pnand %p1112_p1, %p1294_p3 }
  0x30   : > { %1000 = vmatprep.subr.bf16.mxu1 %v999_v6  ;;  %989 = vmatprep.subr.msk.mxu0 %vm485_vm5, %v477_v21 }
  0x31   : > { %1002 = vmatpush3.bf16.msra.mxu1 %v999_v6  ;;  %p1114_p4 = pneg %p1113_p2 }
  0x33   : > { %990 = vmatpush3.msk.msra.mxu0 %vm485_vm5, %v477_v21 }
  0x34   : > { %972 = vmatmul.mubr.msk.f32.vlgmr.msra.gmra.mrb[0].mxu1 %vm288_vm3, %v287_v7 }
  0x35   : > { %978 = vmatprep.mubr.msk.f32.mxu1 %vm288_vm3, %v286_v3  ;;  %v663_v3 = vld [vmem:[#allocation4] sm:$0xff] }
 0x107   : > { %v973_v8 = vpop.f32.mrb[0].mxu1 }
 0x108   : > { %v361_v9 = vpop.f32.mrb[1].mxu1 }
 0x109   : > { %v1003_v10 = vpack.c.bf16 %v973_v8, %v361_v9  ;;  %372 = vrot.lane.b32.xlu0 %v361_v9, %s1208_s24 }
 0x10b   : > { %1004 = vmatprep.subr.bf16.mxu1 %v1003_v10 }
 0x10c   : > { %1006 = vmatpush3.bf16.msra.mxu1 %v1003_v10 }
 0x10d   : > { %374 = vrot.lane.b32.xlu0 %v973_v8, %s1208_s24 }
 0x10f   : > { %979 = vmatmul.mubr.msk.f32.vlgmr.msra.gmra.mrb[2].mxu1 %vm288_vm3, %v287_v7 }
 0x110   : > { %996 = vmatprep.mubr.msk.f32.mxu1 %vm288_vm3, %v940_v42 }
 0x17b   : > { %v373_v11 = vpop.permute.xlu0 %372 }
 0x17c   : > { %379 = vst.msk [vmem:[#allocation2] sm:$0xff] %vm378_vm4, %v373_v11 }
 0x17f   : > { %v375_v12 = vpop.permute.xlu0 %374 }
 0x180   : > { %380 = vst.msk [vmem:[#allocation2 + $0x8] sm:$0xff] %vm378_vm4, %v375_v12 }
 0x1e2   : > { %v980_v19 = vpop.f32.mrb[2].mxu1 }
 0x1e3   : > { %v447_v20 = vpop.f32.mrb[3].mxu1  ;;  %v457_v23 = vmul.f32 2.0, %v980_v19 }
 0x1e4   : > { %v456_v22 = vmul.f32 2.0, %v447_v20 }
 0x1e5   : > { %v459_v26 = vsub.f32 %v457_v23, %v285_v5 }
 0x1e6   : > { %v458_v24 = vsub.f32 %v456_v22, %v284_v4 }
 0x1e8   : > { %462 = vrot.lane.b32.xlu1 %v458_v24, %s1209_s29 }
 0x1ec   : > { %464 = vrot.lane.b32.xlu1 %v459_v26, %s1209_s29  ;;  %s1487_s29 = sand.u32 1, %s1181_s19  }
 0x1ed   : > { %s787_s12 = scalar_lea.sflag [#allocation6], %s1487_s29 }
 0x1f0   : > { %622 = vperm.xlu1 %1093, %v616_v27  }
 0x25a   : > { %v463_v28 = vpop.permute.xlu1 %462 }
 0x25b   : > { %469 = vst.msk [vmem:[#allocation2] sm:$0xff] %vm468_vm6, %v463_v28 }
 0x25e   : > { %v465_v29 = vpop.permute.xlu1 %464 }
 0x25f   : > { %470 = vst.msk [vmem:[#allocation2 + $0x8] sm:$0xff] %vm468_vm6, %v465_v29 }
 0x262   : > { %v471_v30 = vld [vmem:[#allocation2] sm:$0xff] }
 0x263   : > { %991 = vmatprep.mubr.msk.f32.mxu0 %vm478_vm7, %v471_v30 }
 0x266   : > { %v472_v31 = vld [vmem:[#allocation2 + $0x8] sm:$0xff] }
 0x267   : > { %992 = vmatmul.mubr.msk.f32.vlgmr.msra.gmra.mrb[0].mxu0 %vm478_vm7, %v472_v31 }
 0x26f   : > { %v623_v44 = vpop.permute.xlu1 %622 }
 0x33a   : > { %v993_v32 = vpop.f32.mrb[0].mxu0 }
 0x33b   : > { %594 = vrot.lane.b32.xlu1 %v993_v32, %s1211_s23  ;;  %v555_v33 = vpop.f32.mrb[1].mxu0  ;;  %592 = vst.msk [vmem:[#allocation3 + $0x10] sm:$0x1] %vm564_vm8, %v993_v32 }
 0x33c   : > { %598 = vst.msk [vmem:[#allocation3 + $0x11] sm:$0x2] %vm571_vm9, %v993_v32  ;;  %572 = vst.msk [vmem:[#allocation3 + $0x1] sm:$0x2] %vm571_vm9, %v555_v33  ;;  %567 = vrot.lane.b32.xlu0 %v555_v33, %s1211_s23 }
 0x33d   : > { %600 = vst.msk [vmem:[#allocation3 + $0x12] sm:$0x4] %vm574_vm10, %v993_v32  ;;  %575 = vst.msk [vmem:[#allocation3 + $0x2] sm:$0x4] %vm574_vm10, %v555_v33 }
 0x33e   : > { %602 = vst.msk [vmem:[#allocation3 + $0x13] sm:$0x8] %vm577_vm11, %v993_v32  ;;  %578 = vst.msk [vmem:[#allocation3 + $0x3] sm:$0x8] %vm577_vm11, %v555_v33 }
 0x33f   : > { %604 = vst.msk [vmem:[#allocation3 + $0x14] sm:$0x10] %vm580_vm12, %v993_v32  ;;  %581 = vst.msk [vmem:[#allocation3 + $0x4] sm:$0x10] %vm580_vm12, %v555_v33  ;;  %632 = vperm.xlu1 %1093, %v618_v34  }
 0x340   : > { %606 = vst.msk [vmem:[#allocation3 + $0x15] sm:$0x20] %vm583_vm13, %v993_v32  ;;  %584 = vst.msk [vmem:[#allocation3 + $0x5] sm:$0x20] %vm583_vm13, %v555_v33  ;;  %627 = vperm.xlu0 %1094, %v617_v35  }
 0x341   : > { %608 = vst.msk [vmem:[#allocation3 + $0x16] sm:$0x40] %vm586_vm14, %v993_v32  ;;  %587 = vst.msk [vmem:[#allocation3 + $0x6] sm:$0x40] %vm586_vm14, %v555_v33 }
 0x342   : > { %610 = vst.msk [vmem:[#allocation3 + $0x17] sm:$0x80] %vm589_vm15, %v993_v32  ;;  %590 = vst.msk [vmem:[#allocation3 + $0x7] sm:$0x80] %vm589_vm15, %v555_v33 }
 0x343   : > { %565 = vst.msk [vmem:[#allocation3] sm:$0x1] %vm564_vm8, %v555_v33 }
 0x344   : > { %637 = vperm.xlu0 %1094, %v619_v36  }
 0x3ad   : > { %v595_v45 = vpop.permute.xlu1 %594 }
 0x3ae   : > { %597 = vst.msk [vmem:[#allocation3 + $0x11] sm:$0x1] %vm564_vm8, %v595_v45  ;;  %v568_v46 = vpop.permute.xlu0 %567 }
 0x3af   : > { %599 = vst.msk [vmem:[#allocation3 + $0x12] sm:$0x2] %vm571_vm9, %v595_v45  ;;  %573 = vst.msk [vmem:[#allocation3 + $0x2] sm:$0x2] %vm571_vm9, %v568_v46 }
 0x3b0   : > { %601 = vst.msk [vmem:[#allocation3 + $0x13] sm:$0x4] %vm574_vm10, %v595_v45  ;;  %576 = vst.msk [vmem:[#allocation3 + $0x3] sm:$0x4] %vm574_vm10, %v568_v46 }
 0x3b1   : > { %603 = vst.msk [vmem:[#allocation3 + $0x14] sm:$0x8] %vm577_vm11, %v595_v45  ;;  %579 = vst.msk [vmem:[#allocation3 + $0x4] sm:$0x8] %vm577_vm11, %v568_v46 }
 0x3b2   : > { %605 = vst.msk [vmem:[#allocation3 + $0x15] sm:$0x10] %vm580_vm12, %v595_v45  ;;  %582 = vst.msk [vmem:[#allocation3 + $0x5] sm:$0x10] %vm580_vm12, %v568_v46 }
 0x3b3   : > { %607 = vst.msk [vmem:[#allocation3 + $0x16] sm:$0x20] %vm583_vm13, %v595_v45  ;;  %585 = vst.msk [vmem:[#allocation3 + $0x6] sm:$0x20] %vm583_vm13, %v568_v46 }
 0x3b4   : > { %609 = vst.msk [vmem:[#allocation3 + $0x17] sm:$0x40] %vm586_vm14, %v595_v45  ;;  %588 = vst.msk [vmem:[#allocation3 + $0x7] sm:$0x40] %vm586_vm14, %v568_v46 }
 0x3b5   : > { %611 = vst.msk [vmem:[#allocation3 + $0x18] sm:$0x80] %vm589_vm15, %v595_v45  ;;  %591 = vst.msk [vmem:[#allocation3 + $0x8] sm:$0x80] %vm589_vm15, %v568_v46 }
 0x3b6   : > { %570 = vst.msk [vmem:[#allocation3 + $0x1] sm:$0x1] %vm564_vm8, %v568_v46 }
 0x3b8   : > { %v614_v55 = vld [vmem:[#allocation3 + $0x10] sm:$0xff] }
 0x3bc   : > { %v613_v51 = vld [vmem:[#allocation3 + $0x8] sm:$0xff]  ;;  %v615_v60 = vld [vmem:[#allocation3 + $0x18] sm:$0xff] }
 0x3bd   : > { %v612_v47 = vld [vmem:[#allocation3] sm:$0xff] }
 0x3be   : > { %v640_v48 = vadd.f32 %v623_v44, %v612_v47  ;;  %v633_v54 = vpop.permute.xlu1 %632 }
 0x3bf   : > { %v628_v50 = vpop.permute.xlu0 %627  ;;  %v642_v56 = vadd.f32 %v633_v54, %v614_v55 }
 0x3c0   : > { %v937_v49 = vmul.f32 -1.442695, %v640_v48  ;;  %v641_v52 = vadd.f32 %v628_v50, %v613_v51 }
 0x3c1   : > { %v939_v59 = vmul.f32 -1.442695, %v642_v56 }
 0x3c2   : > { %1095 = vpow2.f32 %v937_v49  ;;  %v938_v53 = vmul.f32 -1.442695, %v641_v52 }
 0x3c3   : > { %v638_v58 = vpop.permute.xlu0 %637 }
 0x3c4   : > { %1097 = vpow2.f32 %v938_v53  ;;  %v643_v62 = vadd.f32 %v638_v58, %v615_v60 }
 0x3c5   : > { %1099 = vpow2.f32 %v939_v59 }
 0x3cc   : > { %v1096_v57 = vpop.eup %1095 }
 0x3cd   : > { %v647_v61 = vadd.f32 1.0, %v1096_v57 }
 0x3ce   : > { %v1098_v63 = vpop.eup %1097 }
 0x3cf   : > { %v653_v0 = vadd.f32 1.0, %v1098_v63  ;;  %1101 = vrcp.f32 %v647_v61  ;;  %v1100_v1 = vpop.eup %1099 }
 0x3d0   : > { %1103 = vtanh.f32 %v643_v62  ;;  %v659_v6 = vadd.f32 1.0, %v1100_v1 }
 0x3d1   : > { %1105 = vrcp.f32 %v653_v0 }
 0x3d2   : > { %1107 = vrcp.f32 %v659_v6 }
 0x3d9   : > { %v1102_v2 = vpop.eup %1101 }
 0x3da   : > { %v1104_v4 = vpop.eup %1103 }
 0x3db   : > { %v1106_v5 = vpop.eup %1105  ;;  %v665_v8 = vmul.f32 %v1104_v4, %v1102_v2 }
 0x3dc   : > { %v664_v7 = vmul.f32 %v1106_v5, %v663_v3  ;;  %v1108_v10 = vpop.eup %1107 }
 0x3de   : > { %v666_v9 = vadd.f32 %v665_v8, %v664_v7 }
 0x3e0   : > { %671 = vst.msk [vmem:[#allocation4] sm:$0xff] %vm288_vm3, %v666_v9  ;;  %670 = vst.msk [vmem:[%s252_s9] sm:$0xff] %vm288_vm3, %v666_v9  ;;  %1109 = vtanh.f32 %v666_v9 }
 0x3ea   : > { %v1110_v11 = vpop.eup %1109 }
 0x3eb   : > { %v668_v12 = vmul.f32 %v1110_v11, %v1108_v10 }
 0x3ed   : > { %669 = vst.msk [vmem:[%s1326_s28] sm:$0xff] %vm288_vm3, %v668_v12  ;;  %994 = vmatprep.subr.msk.mxu1 %vm288_vm3, %v668_v12  ;;  %s1213_s28 = smov [#allocation5]  }
 0x3ee   : > { %995 = vmatpush3.xpose.msk.msra.mxu1 %vm288_vm3, %v668_v12  ;;  %s1115_s23 = sshll.u32 %s1213_s28, 4  ;;  %s1116_s23 = int_to_ptr.vmem [resolvable:$false] %s1115_s23 }
 0x3ef   : > { %s1117_s24 = scalar_lea.vmem %s1116_s23, 256  ;;  %p1118_p5 = scmp.lt.s32.totalorder %s804_s26, %s1116_s23 }
 0x3f0   : > { %p1119_p6 = scmp.lt.s32.totalorder %s1117_s24, %s1111_s21 }
 0x3f1   : > { %997 = vmatmul.mubr.msk.f32.vlgmr.msra.gmra.mrb[4].mxu1 %vm288_vm3, %v1386_v43 }
 0x3f2   : > { %p1120_p7 = por %p1119_p6, %p1118_p5 }
 0x3f4   : > { %p1121_p8 = pnand %p1120_p7, %p1114_p4 }
 0x3f6   : > { %1124 = shalt.err (!%p1121_p8)
}
 0x3f7   : > { %s1125_s22 = scalar_lea.hbm %s1421_s8, 128  ;;  %s1129_s10 = scalar_lea.hbm %s1475_s5, 256 }
 0x3f8   : > { %p1126_p10 = scmp.ne.s32.totalorder %s1421_s8, %s1125_s22  ;;  %p1130_p13 = scmp.lt.u32.totalorder %s1421_s8, %s1475_s5 }
 0x3f9   : > { %p1131_p0 = scmp.lt.u32.totalorder %s1129_s10, %s1125_s22  ;;  %p1133_p2 = scmp.lt.u32.totalorder %s1125_s22, %s1421_s8 }
 0x3fa   : > { %p1127_p11 = pnand %p1126_p10, %p1294_p3 }
 0x3fb   : > { %p1132_p1 = por %p1131_p0, %p1130_p13 }
 0x3fc   : > { %p1128_p12 = pneg %p1127_p11 }
 0x3fd   : > { %p1134_p4 = por %p1133_p2, %p1132_p1 }
 0x3ff   : > { %p1135_p5 = pnand %p1134_p4, %p1128_p12 }
 0x401   : > { %1138 = shalt.err (!%p1135_p5)
}
 0x402   : > { %1015 = dma.vmem_to_hbm [thread:$0]  (%p1294_p3), %s804_s26, 128, %s1421_s8, %s787_s12   ;;  %vm775_vm2 = vcmask 97312  }
 0x403   : > { %s1214_s15 = smov 4  }
 0x4c4   : > { %v998_v13 = vpop.f32.mrb[4].mxu1 }
 0x4c5   : > { %v758_v14 = vpop.f32.mrb[5].mxu1  ;;  %771 = vrot.lane.b32.xlu0 %v998_v13, %s1214_s15 }
 0x4c6   : > { %769 = vrot.lane.b32.xlu1 %v758_v14, %s1214_s15 }
 0x537   : > { %v772_v15 = vpop.permute.xlu0 %771 }
 0x538   : > { %777 = vst.msk [vmem:[#allocation2 + $0x8] sm:$0xff] %vm775_vm2, %v772_v15  ;;  %v770_v16 = vpop.permute.xlu1 %769 }
 0x539   : > { %776 = vst.msk [vmem:[#allocation2] sm:$0xff] %vm775_vm2, %v770_v16 }
 0x53a PF: > { %p1021_p6 = scmp.ge.s32.totalorder %s1205_s25, 2  ;;  %s826_s16 = sand.u32 1, %s1177_s18  }
 0x53b   : > { %s827_s30 = scalar_lea.sflag [#allocation6], %s826_s16 }
 0x53c   : > { %p1018_p7 = pnand %p1021_p6, %p1304_p9 }
 0x53e   : > { %1172 = dma.done.wait (!%p1018_p7), %s827_s30, 128  }
 0x53f   : > { %1174 = vsyncadd (!%p1018_p7), %s827_s30, 4294967168  ;;  %s19_s25 = sadd.s32 1, %s1205_s25   ;;  %s1488_s17 = sld [smem:[#allocation12_spill]] }
 0x540   : > { %p16_p3 = scmp.ge.s32.totalorder %s19_s25, 10   ;;  %s1489_s21 = sld [smem:[#allocation8_spill]] }
 0x541   : > { %s1490_s22 = sld [smem:[#allocation9_spill]]  ;;  %s1491_s23 = sld [smem:[#allocation10_spill]] }
 0x542   : > { %s1492_s24 = sld [smem:[#allocation11_spill]]  ;;  %s1493_s18 = smov %s1181_s19 }
 0x543   : > { %s1494_s19 = smov %s1185_s20  ;;  %18 = sbr.rel (!%p16_p3) target bundleno = 5 (0x5), region = 87 }
 0x545   : > { %s1495_s20 = smov %s1488_s17 }
 0x54a   :  { %832 = vsyncpa [#allocation6], 1 }
 0x54b   :  { %834 = vsyncpa [#allocation6 + $0x1], 1 }

// kernel: _lambda_.3
= control target key start
LH: loop header
LB: loop body
LE: loop exit
PB: predicated region body
PF: predicated region fallthrough
CT: control target
= control target key end

     0   :  { %11 = vsyncpa [#allocation6], 0  ;;  %s1476_s0 = inlined_call_operand.vmem [shape: f32[2,4,16,8], index: 0, kind: input, shape index: {}]   ;;  %s1477_s1 = inlined_call_operand.vmem [shape: f32[16,16], index: 1, kind: input, shape index: {}]   ;;  %s1478_s2 = inlined_call_operand.vmem [shape: f32[48,32], index: 2, kind: input, shape index: {}]   ;;  %s1479_s3 = inlined_call_operand.vmem [shape: f32[32,1], index: 3, kind: input, shape index: {}]   ;;  %s1480_s4 = inlined_call_operand.vmem [shape: f32[2,4,8,16], index: 4, kind: output, shape index: {0}]   ;;  %s1481_s5 = inlined_call_operand.hbm [shape: f32[2,8,16], index: 5, kind: output, shape index: {1}]  }
   0x1   :  { %13 = vsyncpa [#allocation6 + $0x1], 0  ;;  %s1248_s18 = smov 0   ;;  %s1250_s19 = smov 0  }
   0x2   :  { %s1252_s20 = smov 0   ;;  %s1254_s21 = smov 0  }
   0x3   :  { %s1256_s22 = smov 0   ;;  %s1258_s23 = smov 0  }
   0x4   :  { %s1260_s24 = smov 0   ;;  %s1262_s25 = smov 0  }
   0x5 LB: > { %1486 = sst [smem:[#allocation8_spill]] %s1200_s23  ;;  %s915_s26 = sadd.s32 4294967295, %s1208_s25   ;;  %s1208_s25 = sphi %s1262_s25, %s19_s25   ;;  %s1204_s24 = sphi %s1260_s24, %s1498_s24   ;;  %s1200_s23 = sphi %s1258_s23, %s1497_s23   ;;  %s1196_s22 = sphi %s1256_s22, %s1496_s22   ;;  %s1192_s21 = sphi %s1254_s21, %s1495_s21   ;;  %s1188_s20 = sphi %s1252_s20, %s1501_s20   ;;  %s1184_s19 = sphi %s1250_s19, %s1500_s19   ;;  %s1180_s18 = sphi %s1248_s18, %s1499_s18  }
   0x6   : > { %1487 = sst [smem:[#allocation9_spill]] %s1204_s24  ;;  %s916_s27 = sadd.s32 4294967294, %s1208_s25  }
   0x7   : > { %s28_s28 = sadd.s32 1, %s1200_s23  ;;  %s31_s29 = sadd.s32 1, %s1204_s24 }
   0x8   : > { %p29_p0 = scmp.ge.s32.totalorder %s28_s28, 4  ;;  %p167_p1 = scmp.ne.s32.totalorder %s1188_s20, %s1184_s19 }
   0x9   : > { %p168_p2 = scmp.eq.s32.totalorder %s915_s26, 7  ;;  %p173_p4 = scmp.ne.s32.totalorder %s1184_s19, %s1180_s18 }
   0xa   : > { %s1503_s28 = smov (%p29_p0, %s28_s28), 0  ;;  %s1505_s29 = smov (!%p29_p0, %s31_s29), %s1204_s24 }
   0xb   : > { %1488 = sst [smem:[#allocation10_spill]] %s1503_s28  ;;  %p1297_p3 = por %p168_p2, %p167_p1 }
   0xc   : > { %p33_p5 = scmp.ge.s32.totalorder %s1505_s29, 2  ;;  %p174_p6 = scmp.eq.s32.totalorder %s916_s27, 7 }
   0xd   : > { %p919_p7 = scmp.ge.s32.totalorder %s1208_s25, 1  ;;  %p213_p8 = scmp.lt.s32.totalorder %s1208_s25, 9 }
   0xe   : > { %s1507_s29 = smov (%p33_p5, %s1505_s29), 0  ;;  %p1307_p9 = por %p174_p6, %p173_p4 }
   0xf   : > { %1490 = sst [smem:[#allocation11_spill]] %s1507_s29  ;;  %p214_p10 = pnand %p919_p7, %p213_p8 }
  0x10   : > { %s154_s7 = ssub.s32 %s1204_s24, %s1507_s29  ;;  %s157_s8 = sadd.s32 1, %s1188_s20 }
  0x11   : > { %p155_p11 = scmp.eq.s32.totalorder %s154_s7, 0  ;;  %217 = sbr.rel (%p214_p10) target bundleno = 1338 (0x53a), region = 36 }
  0x12   : > { %s1485_s10 = sand.u32 (!%p214_p10), 1, %s1184_s19   ;;  %p253_p12 = scmp.lt.s32.totalorder (!%p214_p10), %s1196_s22, 1 }
  0x13   : > { %s1315_s9 = scalar_select %p155_p11, %s1188_s20, %s157_s8  }
  0x14   : > { %s1321_s11 = sshll.u32 (!%p214_p10), %s1485_s10, 3  ;;  %p255_p13 = scmp.lt.s32.totalorder (!%p214_p10), %s1192_s21, 3 }
  0x15   : > { %1492 = sst [smem:[#allocation12_spill]] %s1315_s9  ;;  %s252_s9 = scalar_lea.vmem (!%p214_p10), [#allocation5], %s1321_s11 }
  0x16   : > { %p926_p0 = scmp.ne.s32.totalorder (!%p214_p10), %s1192_s21, 0 }
  0x18   : > { %s254_s12 = scalar_select %p253_p12, %s1196_s22, 1 }
  0x19   : > { %s256_s13 = scalar_select %p255_p13, %s1192_s21, 3 }
  0x1a   : > { %s922_s14 = sshll.u32 %s254_s12, 3  ;;  %s924_s15 = sshll.u32 %s254_s12, 2  ;;  %vm274_vm0 = vcmask (!%p926_p0), 130112   ;;  %vm277_vm1 = vcmask (!%p926_p0), 130048   ;;  %v1210_v0 = vmov (!%p926_p0), 0.0  }
  0x1b   : > { %s921_s16 = sshll.u32 %s256_s13, 1  ;;  %s267_s17 = sadd.s32 %s924_s15, %s256_s13  ;;  %275 = vst.msk [vmem:[#allocation2] sm:$0xff] (!%p926_p0), %vm274_vm0, %v1210_v0  ;;  %276 = vst.msk [vmem:[#allocation2 + $0x8] sm:$0xff] (!%p926_p0), %vm274_vm0, %v1210_v0 }
  0x1c   : > { %s259_s26 = sadd.s32 %s922_s14, %s921_s16  ;;  %s925_s27 = sshll.u32 %s267_s17, 3  ;;  %278 = vst.msk [vmem:[#allocation4] sm:$0xff] (!%p926_p0), %vm277_vm1, %v1210_v0 }
  0x1d   : > { %s923_s7 = sshll.u32 %s259_s26, 3  ;;  %s1329_s28 = scalar_lea.vmem %s1480_s4, %s925_s27 }
  0x1e   : > { %s261_s10 = scalar_lea.vmem %s1476_s0, %s923_s7  ;;  %273 = sbr.rel (%p926_p0) target bundleno = 37 (0x25), region = 40 }
  0x25 PF: > { %v279_v1 = vld [vmem:[%s261_s10] sm:$0xff]  ;;  %v280_v2 = vld [vmem:[%s261_s10 + $0x8] sm:$0xff]  ;;  %vm281_vm2 = vcmask 64512   ;;  %vm288_vm3 = vcmask 130048   ;;  %s1211_s24 = smov 16   ;;  %vm378_vm4 = vcmask 261248   ;;  %v669_v39 = vlaneseq }
  0x26   : > { %v286_v3 = vld [vmem:[%s1477_s1] sm:$0xff]  ;;  %282 = vst.msk [vmem:[#allocation2] sm:$0xff] %vm281_vm2, %v279_v1  ;;  %283 = vst.msk [vmem:[#allocation2 + $0x8] sm:$0xff] %vm281_vm2, %v280_v2  ;;  %v287_v7 = vld [vmem:[%s1477_s1 + $0x8] sm:$0xff]  ;;  %s1212_s21 = smov 32   ;;  %v1213_v27 = vmov 0  }
  0x27   : > { %968 = vmatprep.mubr.msk.f32.mxu1 %vm288_vm3, %v286_v3  ;;  %v473_v13 = vld [vmem:[%s1478_s2] sm:$0xff]  ;;  %v474_v14 = vld [vmem:[%s1478_s2 + $0x8] sm:$0xff]  ;;  %v475_v16 = vld [vmem:[%s1478_s2 + $0x10] sm:$0xff]  ;;  %1097 = vset.pattern.permute.xlu0 %v1213_v27  ;;  %vm468_vm5 = vcmask 392448   ;;  %vm479_vm6 = vcmask 392192   ;;  %vm561_vm7 = vcmask 122880  }
  0x28   : > { %v1006_v15 = vpack.c.bf16 %v474_v14, %v473_v13  ;;  %v476_v17 = vld [vmem:[%s1478_s2 + $0x18] sm:$0xff]  ;;  %v477_v19 = vld [vmem:[%s1478_s2 + $0x20] sm:$0xff]  ;;  %v478_v20 = vld [vmem:[%s1478_s2 + $0x28] sm:$0xff]  ;;  %1096 = vset.pattern.permute.xlu1 %v1213_v27  ;;  %vm568_vm8 = vcmask 123905   ;;  %vm571_vm9 = vcmask 124930   ;;  %vm574_vm10 = vcmask 125955  }
  0x29   : > { %v1010_v18 = vpack.c.bf16 %v476_v17, %v475_v16  ;;  %v1014_v21 = vpack.c.bf16 %v478_v20, %v477_v19  ;;  %v613_v29 = vld [vmem:[%s1479_s3] sm:$0xff]  ;;  %vm577_vm11 = vcmask 126980   ;;  %vm580_vm12 = vcmask 128005   ;;  %s1214_s10 = smov 112   ;;  %v615_v36 = vld [vmem:[%s1479_s3 + $0x10] sm:$0xff]  ;;  %v614_v37 = vld [vmem:[%s1479_s3 + $0x8] sm:$0xff] }
  0x2a   : > { %1007 = vmatprep.subr.bf16.mxu0 %v1006_v15  ;;  %vm583_vm13 = vcmask 129030   ;;  %vm586_vm14 = vcmask 130055   ;;  %v616_v38 = vld [vmem:[%s1479_s3 + $0x18] sm:$0xff]  ;;  %v670_v40 = vshrl.u32 %v669_v39, 7  ;;  %v673_v41 = vand.u32 127, %v669_v39  ;;  %s942_s27 = sshll.u32 %s1196_s22, 7 }
  0x2b   : > { %1009 = vmatpush3.bf16.msra.mxu0 %v1006_v15  ;;  %v1215_v43 = vmov 0.0   ;;  %s800_s7 = sshll.u32 %s252_s9, 4  ;;  %s1427_s12 = scalar_lea.hbm %s1481_s5, %s942_s27  ;;  %s801_s7 = int_to_ptr.vmem [resolvable:$true] %s800_s7 }
  0x2c   : > { %1011 = vmatprep.subr.bf16.mxu0 %v1010_v18  ;;  %v671_v42 = vadd.s32 8, %v670_v40  ;;  %vm674_vm15 = vcmp.eq.s32.totalorder %v670_v40, %v673_v41 }
  0x2d   : > { %v284_v4 = vld [vmem:[#allocation2] sm:$0xff]  ;;  %v285_v5 = vld [vmem:[#allocation2 + $0x8] sm:$0xff]  ;;  %v936_v44 = vsel %vm674_vm15, 1.0, %v1215_v43 }
  0x2e   : > { %v998_v6 = vpack.c.bf16 %v285_v5, %v284_v4  ;;  %vm675_vm0 = vcmp.eq.s32.totalorder %v671_v42, %v673_v41 }
  0x2f   : > { %1013 = vmatpush3.bf16.msra.mxu0 %v1010_v18  ;;  %v1392_v45 = vsel %vm675_vm0, 1.0, %v1215_v43 }
  0x30   : > { %999 = vmatprep.subr.bf16.mxu1 %v998_v6  ;;  %1015 = vmatprep.subr.bf16.mxu0 %v1014_v21 }
  0x31   : > { %1001 = vmatpush3.bf16.msra.mxu1 %v998_v6 }
  0x33   : > { %1017 = vmatpush3.bf16.msra.mxu0 %v1014_v21 }
  0x34   : > { %969 = vmatmul.mubr.msk.f32.vlgmr.msra.gmra.mrb[0].mxu1 %vm288_vm3, %v287_v7 }
  0x35   : > { %975 = vmatprep.mubr.msk.f32.mxu1 %vm288_vm3, %v286_v3 }
 0x107   : > { %v970_v8 = vpop.f32.mrb[0].mxu1 }
 0x108   : > { %v361_v9 = vpop.f32.mrb[1].mxu1 }
 0x109   : > { %v1002_v10 = vpack.c.bf16 %v970_v8, %v361_v9  ;;  %372 = vrot.lane.b32.xlu0 %v361_v9, %s1211_s24 }
 0x10b   : > { %1003 = vmatprep.subr.bf16.mxu1 %v1002_v10 }
 0x10c   : > { %1005 = vmatpush3.bf16.msra.mxu1 %v1002_v10 }
 0x10d   : > { %374 = vrot.lane.b32.xlu0 %v970_v8, %s1211_s24  ;;  %s1114_s24 = scalar_lea.vmem %s801_s7, 128 }
 0x10e   : > { %p1115_p1 = scmp.ne.s32.totalorder %s801_s7, %s1114_s24 }
 0x10f   : > { %976 = vmatmul.mubr.msk.f32.vlgmr.msra.gmra.mrb[2].mxu1 %vm288_vm3, %v287_v7 }
 0x110   : > { %995 = vmatprep.mubr.msk.f32.mxu1 %vm288_vm3, %v936_v44  ;;  %p1116_p2 = pnand %p1115_p1, %p1297_p3 }
 0x112   : > { %p1117_p4 = pneg %p1116_p2 }
 0x17b   : > { %v373_v11 = vpop.permute.xlu0 %372 }
 0x17c   : > { %379 = vst.msk [vmem:[#allocation2] sm:$0xff] %vm378_vm4, %v373_v11 }
 0x17f   : > { %v375_v12 = vpop.permute.xlu0 %374 }
 0x180   : > { %380 = vst.msk [vmem:[#allocation2 + $0x8] sm:$0xff] %vm378_vm4, %v375_v12 }
 0x1e2   : > { %v977_v22 = vpop.f32.mrb[2].mxu1 }
 0x1e3   : > { %v447_v23 = vpop.f32.mrb[3].mxu1  ;;  %v457_v25 = vmul.f32 2.0, %v977_v22 }
 0x1e4   : > { %v456_v24 = vmul.f32 2.0, %v447_v23 }
 0x1e5   : > { %v459_v28 = vsub.f32 %v457_v25, %v285_v5  ;;  %v660_v5 = vld [vmem:[#allocation4] sm:$0xff] }
 0x1e6   : > { %v458_v26 = vsub.f32 %v456_v24, %v284_v4 }
 0x1e8   : > { %462 = vrot.lane.b32.xlu1 %v458_v26, %s1212_s21 }
 0x1ec   : > { %464 = vrot.lane.b32.xlu1 %v459_v28, %s1212_s21  ;;  %s1493_s21 = sand.u32 1, %s1184_s19  }
 0x1ed   : > { %s784_s23 = scalar_lea.sflag [#allocation6], %s1493_s21 }
 0x1f0   : > { %619 = vperm.xlu1 %1096, %v613_v29  }
 0x25a   : > { %v463_v30 = vpop.permute.xlu1 %462 }
 0x25b   : > { %469 = vst.msk [vmem:[#allocation2] sm:$0xff] %vm468_vm5, %v463_v30 }
 0x25e   : > { %v465_v31 = vpop.permute.xlu1 %464 }
 0x25f   : > { %470 = vst.msk [vmem:[#allocation2 + $0x8] sm:$0xff] %vm468_vm5, %v465_v31 }
 0x262   : > { %v471_v32 = vld [vmem:[#allocation2] sm:$0xff] }
 0x263   : > { %990 = vmatprep.mubr.msk.f32.mxu0 %vm479_vm6, %v471_v32 }
 0x266   : > { %v472_v33 = vld [vmem:[#allocation2 + $0x8] sm:$0xff] }
 0x267   : > { %991 = vmatmul.mubr.msk.f32.vlgmr.msra.gmra.mrb[0].mxu0 %vm479_vm6, %v472_v33 }
 0x26f   : > { %v620_v46 = vpop.permute.xlu1 %619 }
 0x33a   : > { %v992_v34 = vpop.f32.mrb[0].mxu0 }
 0x33b   : > { %591 = vrot.lane.b32.xlu1 %v992_v34, %s1214_s10  ;;  %v552_v35 = vpop.f32.mrb[1].mxu0  ;;  %589 = vst.msk [vmem:[#allocation3 + $0x10] sm:$0x1] %vm561_vm7, %v992_v34 }
 0x33c   : > { %595 = vst.msk [vmem:[#allocation3 + $0x11] sm:$0x2] %vm568_vm8, %v992_v34  ;;  %569 = vst.msk [vmem:[#allocation3 + $0x1] sm:$0x2] %vm568_vm8, %v552_v35  ;;  %564 = vrot.lane.b32.xlu0 %v552_v35, %s1214_s10 }
 0x33d   : > { %597 = vst.msk [vmem:[#allocation3 + $0x12] sm:$0x4] %vm571_vm9, %v992_v34  ;;  %572 = vst.msk [vmem:[#allocation3 + $0x2] sm:$0x4] %vm571_vm9, %v552_v35 }
 0x33e   : > { %599 = vst.msk [vmem:[#allocation3 + $0x13] sm:$0x8] %vm574_vm10, %v992_v34  ;;  %575 = vst.msk [vmem:[#allocation3 + $0x3] sm:$0x8] %vm574_vm10, %v552_v35 }
 0x33f   : > { %601 = vst.msk [vmem:[#allocation3 + $0x14] sm:$0x10] %vm577_vm11, %v992_v34  ;;  %578 = vst.msk [vmem:[#allocation3 + $0x4] sm:$0x10] %vm577_vm11, %v552_v35  ;;  %629 = vperm.xlu1 %1096, %v615_v36  }
 0x340   : > { %603 = vst.msk [vmem:[#allocation3 + $0x15] sm:$0x20] %vm580_vm12, %v992_v34  ;;  %581 = vst.msk [vmem:[#allocation3 + $0x5] sm:$0x20] %vm580_vm12, %v552_v35  ;;  %624 = vperm.xlu0 %1097, %v614_v37  }
 0x341   : > { %605 = vst.msk [vmem:[#allocation3 + $0x16] sm:$0x40] %vm583_vm13, %v992_v34  ;;  %584 = vst.msk [vmem:[#allocation3 + $0x6] sm:$0x40] %vm583_vm13, %v552_v35 }
 0x342   : > { %607 = vst.msk [vmem:[#allocation3 + $0x17] sm:$0x80] %vm586_vm14, %v992_v34  ;;  %587 = vst.msk [vmem:[#allocation3 + $0x7] sm:$0x80] %vm586_vm14, %v552_v35 }
 0x343   : > { %562 = vst.msk [vmem:[#allocation3] sm:$0x1] %vm561_vm7, %v552_v35 }
 0x344   : > { %634 = vperm.xlu0 %1097, %v616_v38  }
 0x3ad   : > { %v592_v47 = vpop.permute.xlu1 %591 }
 0x3ae   : > { %594 = vst.msk [vmem:[#allocation3 + $0x11] sm:$0x1] %vm561_vm7, %v592_v47  ;;  %v565_v48 = vpop.permute.xlu0 %564 }
 0x3af   : > { %596 = vst.msk [vmem:[#allocation3 + $0x12] sm:$0x2] %vm568_vm8, %v592_v47  ;;  %570 = vst.msk [vmem:[#allocation3 + $0x2] sm:$0x2] %vm568_vm8, %v565_v48 }
 0x3b0   : > { %598 = vst.msk [vmem:[#allocation3 + $0x13] sm:$0x4] %vm571_vm9, %v592_v47  ;;  %573 = vst.msk [vmem:[#allocation3 + $0x3] sm:$0x4] %vm571_vm9, %v565_v48 }
 0x3b1   : > { %600 = vst.msk [vmem:[#allocation3 + $0x14] sm:$0x8] %vm574_vm10, %v592_v47  ;;  %576 = vst.msk [vmem:[#allocation3 + $0x4] sm:$0x8] %vm574_vm10, %v565_v48 }
 0x3b2   : > { %602 = vst.msk [vmem:[#allocation3 + $0x15] sm:$0x10] %vm577_vm11, %v592_v47  ;;  %579 = vst.msk [vmem:[#allocation3 + $0x5] sm:$0x10] %vm577_vm11, %v565_v48 }
 0x3b3   : > { %604 = vst.msk [vmem:[#allocation3 + $0x16] sm:$0x20] %vm580_vm12, %v592_v47  ;;  %582 = vst.msk [vmem:[#allocation3 + $0x6] sm:$0x20] %vm580_vm12, %v565_v48 }
 0x3b4   : > { %606 = vst.msk [vmem:[#allocation3 + $0x17] sm:$0x40] %vm583_vm13, %v592_v47  ;;  %585 = vst.msk [vmem:[#allocation3 + $0x7] sm:$0x40] %vm583_vm13, %v565_v48 }
 0x3b5   : > { %608 = vst.msk [vmem:[#allocation3 + $0x18] sm:$0x80] %vm586_vm14, %v592_v47  ;;  %588 = vst.msk [vmem:[#allocation3 + $0x8] sm:$0x80] %vm586_vm14, %v565_v48 }
 0x3b6   : > { %567 = vst.msk [vmem:[#allocation3 + $0x1] sm:$0x1] %vm561_vm7, %v565_v48 }
 0x3b8   : > { %v611_v57 = vld [vmem:[#allocation3 + $0x10] sm:$0xff] }
 0x3bc   : > { %v610_v53 = vld [vmem:[#allocation3 + $0x8] sm:$0xff]  ;;  %v612_v62 = vld [vmem:[#allocation3 + $0x18] sm:$0xff] }
 0x3bd   : > { %v609_v49 = vld [vmem:[#allocation3] sm:$0xff] }
 0x3be   : > { %v637_v50 = vadd.f32 %v620_v46, %v609_v49  ;;  %v630_v56 = vpop.permute.xlu1 %629 }
 0x3bf   : > { %v625_v52 = vpop.permute.xlu0 %624  ;;  %v639_v58 = vadd.f32 %v630_v56, %v611_v57 }
 0x3c0   : > { %v933_v51 = vmul.f32 -1.442695, %v637_v50  ;;  %v638_v54 = vadd.f32 %v625_v52, %v610_v53 }
 0x3c1   : > { %v935_v61 = vmul.f32 -1.442695, %v639_v58 }
 0x3c2   : > { %1098 = vpow2.f32 %v933_v51  ;;  %v934_v55 = vmul.f32 -1.442695, %v638_v54 }
 0x3c3   : > { %v635_v60 = vpop.permute.xlu0 %634 }
 0x3c4   : > { %1100 = vpow2.f32 %v934_v55  ;;  %v640_v0 = vadd.f32 %v635_v60, %v612_v62 }
 0x3c5   : > { %1102 = vpow2.f32 %v935_v61 }
 0x3cc   : > { %v1099_v59 = vpop.eup %1098 }
 0x3cd   : > { %v644_v63 = vadd.f32 1.0, %v1099_v59 }
 0x3ce   : > { %v1101_v1 = vpop.eup %1100 }
 0x3cf   : > { %v650_v2 = vadd.f32 1.0, %v1101_v1  ;;  %1104 = vrcp.f32 %v644_v63  ;;  %v1103_v3 = vpop.eup %1102 }
 0x3d0   : > { %1106 = vtanh.f32 %v640_v0  ;;  %v656_v8 = vadd.f32 1.0, %v1103_v3 }
 0x3d1   : > { %1108 = vrcp.f32 %v650_v2 }
 0x3d2   : > { %1110 = vrcp.f32 %v656_v8 }
 0x3d9   : > { %v1105_v4 = vpop.eup %1104 }
 0x3da   : > { %v1107_v6 = vpop.eup %1106 }
 0x3db   : > { %v1109_v7 = vpop.eup %1108  ;;  %v662_v10 = vmul.f32 %v1107_v6, %v1105_v4 }
 0x3dc   : > { %v661_v9 = vmul.f32 %v1109_v7, %v660_v5  ;;  %v1111_v12 = vpop.eup %1110 }
 0x3de   : > { %v663_v11 = vadd.f32 %v662_v10, %v661_v9 }
 0x3e0   : > { %668 = vst.msk [vmem:[#allocation4] sm:$0xff] %vm288_vm3, %v663_v11  ;;  %667 = vst.msk [vmem:[%s252_s9] sm:$0xff] %vm288_vm3, %v663_v11  ;;  %1112 = vtanh.f32 %v663_v11 }
 0x3ea   : > { %v1113_v13 = vpop.eup %1112 }
 0x3eb   : > { %v665_v14 = vmul.f32 %v1113_v13, %v1111_v12 }
 0x3ed   : > { %666 = vst.msk [vmem:[%s1329_s28] sm:$0xff] %vm288_vm3, %v665_v14  ;;  %993 = vmatprep.subr.msk.mxu1 %vm288_vm3, %v665_v14  ;;  %s1216_s28 = smov [#allocation5]  }
 0x3ee   : > { %994 = vmatpush3.xpose.msk.msra.mxu1 %vm288_vm3, %v665_v14  ;;  %s1118_s10 = sshll.u32 %s1216_s28, 4  ;;  %s1119_s10 = int_to_ptr.vmem [resolvable:$false] %s1118_s10 }
 0x3ef   : > { %s1120_s13 = scalar_lea.vmem %s1119_s10, 256  ;;  %p1121_p5 = scmp.lt.s32.totalorder %s801_s7, %s1119_s10 }
 0x3f0   : > { %p1122_p6 = scmp.lt.s32.totalorder %s1120_s13, %s1114_s24 }
 0x3f1   : > { %996 = vmatmul.mubr.msk.f32.vlgmr.msra.gmra.mrb[4].mxu1 %vm288_vm3, %v1392_v45 }
 0x3f2   : > { %p1123_p7 = por %p1122_p6, %p1121_p5 }
 0x3f4   : > { %p1124_p8 = pnand %p1123_p7, %p1117_p4 }
 0x3f6   : > { %1127 = shalt.err (!%p1124_p8)
}
 0x3f7   : > { %s1128_s22 = scalar_lea.hbm %s1427_s12, 128  ;;  %s1132_s14 = scalar_lea.hbm %s1481_s5, 256 }
 0x3f8   : > { %p1129_p10 = scmp.ne.s32.totalorder %s1427_s12, %s1128_s22  ;;  %p1133_p13 = scmp.lt.u32.totalorder %s1427_s12, %s1481_s5 }
 0x3f9   : > { %p1134_p0 = scmp.lt.u32.totalorder %s1132_s14, %s1128_s22  ;;  %p1136_p2 = scmp.lt.u32.totalorder %s1128_s22, %s1427_s12 }
 0x3fa   : > { %p1130_p11 = pnand %p1129_p10, %p1297_p3 }
 0x3fb   : > { %p1135_p1 = por %p1134_p0, %p1133_p13 }
 0x3fc   : > { %p1131_p12 = pneg %p1130_p11 }
 0x3fd   : > { %p1137_p4 = por %p1136_p2, %p1135_p1 }
 0x3ff   : > { %p1138_p5 = pnand %p1137_p4, %p1131_p12 }
 0x401   : > { %1141 = shalt.err (!%p1138_p5)
}
 0x402   : > { %1018 = dma.vmem_to_hbm [thread:$0]  (%p1297_p3), %s801_s7, 128, %s1427_s12, %s784_s23   ;;  %vm772_vm1 = vcmask 130112  }
 0x403   : > { %s1217_s17 = smov 8  }
 0x4c4   : > { %v997_v15 = vpop.f32.mrb[4].mxu1 }
 0x4c5   : > { %v755_v16 = vpop.f32.mrb[5].mxu1  ;;  %768 = vrot.lane.b32.xlu0 %v997_v15, %s1217_s17 }
 0x4c6   : > { %766 = vrot.lane.b32.xlu1 %v755_v16, %s1217_s17 }
 0x537   : > { %v769_v17 = vpop.permute.xlu0 %768 }
 0x538   : > { %774 = vst.msk [vmem:[#allocation2 + $0x8] sm:$0xff] %vm772_vm1, %v769_v17  ;;  %v767_v18 = vpop.permute.xlu1 %766 }
 0x539   : > { %773 = vst.msk [vmem:[#allocation2] sm:$0xff] %vm772_vm1, %v767_v18 }
 0x53a PF: > { %p1024_p6 = scmp.ge.s32.totalorder %s1208_s25, 2  ;;  %s823_s26 = sand.u32 1, %s1180_s18  }
 0x53b   : > { %s824_s30 = scalar_lea.sflag [#allocation6], %s823_s26 }
 0x53c   : > { %p1021_p7 = pnand %p1024_p6, %p1307_p9 }
 0x53e   : > { %1175 = dma.done.wait (!%p1021_p7), %s824_s30, 128  }
 0x53f   : > { %1177 = vsyncadd (!%p1021_p7), %s824_s30, 4294967168  ;;  %s19_s25 = sadd.s32 1, %s1208_s25   ;;  %s1494_s27 = sld [smem:[#allocation12_spill]] }
 0x540   : > { %p16_p3 = scmp.ge.s32.totalorder %s19_s25, 10   ;;  %s1495_s21 = sld [smem:[#allocation8_spill]] }
 0x541   : > { %s1496_s22 = sld [smem:[#allocation9_spill]]  ;;  %s1497_s23 = sld [smem:[#allocation10_spill]] }
 0x542   : > { %s1498_s24 = sld [smem:[#allocation11_spill]]  ;;  %s1499_s18 = smov %s1184_s19 }
 0x543   : > { %s1500_s19 = smov %s1188_s20  ;;  %18 = sbr.rel (!%p16_p3) target bundleno = 5 (0x5), region = 87 }
 0x545   : > { %s1501_s20 = smov %s1494_s27 }
 0x54a   :  { %829 = vsyncpa [#allocation6], 1 }
 0x54b   :  { %831 = vsyncpa [#allocation6 + $0x1], 1 }

</bundles_post_ra>
